<compile_context>
chip_gen: v7x
topology: tpu7x:2x2x1
jax: 0.10.0
libtpu: 0.0.40
codegen_flags: <defaults>
</compile_context>

<pallas_src>
import jax
import jax.numpy as jnp
from jax.experimental import pallas as pl
from jax.experimental.pallas import tpu as pltpu


# ----------------------------- fused Pallas kernel -------------------------- #

def _byol_fused_kernel(x_ref, enc_w_ref, enc_b_ref,
                       pj_w1_ref, pj_b1_ref, pj_w2_ref, pj_b2_ref,
                       pr_w1_ref, pr_b1_ref, pr_w2_ref, pr_b2_ref,
                       tj_w1_ref, tj_b1_ref, tj_w2_ref, tj_b2_ref,
                       out_ref):
    bf16 = jnp.bfloat16

    def linear(h_bf16, w_ref, b_ref):
        # bf16 MXU matmul, f32 accumulation, f32 bias add.
        y = jnp.dot(h_bf16, w_ref[...], preferred_element_type=jnp.float32)
        return y + b_ref[...]

    def mlp2(h_bf16, w1_ref, b1_ref, w2_ref, b2_ref):
        # ProjectionHead / predictor: Linear -> ReLU -> Linear (f32 epilogue).
        h = jnp.maximum(linear(h_bf16, w1_ref, b1_ref), 0.0)
        return linear(h.astype(bf16), w2_ref, b2_ref)

    def l2norm(v):
        # F.normalize(v, dim=1): v / max(||v||, 1e-12) == v * rsqrt(max(ss, 1e-24))
        ss = jnp.sum(v * v, axis=1, keepdims=True)
        return v * jax.lax.rsqrt(jnp.maximum(ss, 1e-24))

    # Shared encoder (online_encoder IS target_encoder in the torch module).
    f = jnp.maximum(linear(x_ref[...], enc_w_ref, enc_b_ref), 0.0)
    f_bf = f.astype(bf16)

    o = mlp2(f_bf, pj_w1_ref, pj_b1_ref, pj_w2_ref, pj_b2_ref)            # online projector
    p = mlp2(o.astype(bf16), pr_w1_ref, pr_b1_ref, pr_w2_ref, pr_b2_ref)  # online predictor
    t = mlp2(f_bf, tj_w1_ref, tj_b1_ref, tj_w2_ref, tj_b2_ref)            # target projector

    # Lane-dense output slab: [ normalize(p) | normalize(t) ]
    P = pj_w2_ref.shape[1]
    out_ref[:, 0:P] = l2norm(p)
    out_ref[:, P:2 * P] = l2norm(t)


# --------------------------------- wrappers --------------------------------- #

_PARAM_ORDER = ("enc_w", "enc_b",
                "pj_w1", "pj_b1", "pj_w2", "pj_b2",
                "pr_w1", "pr_b1", "pr_w2", "pr_b2",
                "tj_w1", "tj_b1", "tj_w2", "tj_b2")


def _full_spec(shape):
    # Whole-array block; grid is (1,), so index_map always returns block 0.
    return pl.BlockSpec(shape, lambda i, n=len(shape): (0,) * n)


def _flatten_pad(x, in_pad):
    """NCHW -> (B, in_pad) bf16, zero-padded so the lane dim is a multiple of 128."""
    B = x.shape[0]
    xf = x.reshape(B, -1).astype(jnp.float32)
    pad = in_pad - xf.shape[1]
    if pad:
        xf = jnp.pad(xf, ((0, 0), (0, pad)))
    return xf.astype(jnp.bfloat16)


def byol_fused_call(params, xcat):
    """xcat: (2B, in_pad) bf16 -> (2B, 2*proj_dim) f32 slab [p | t]."""
    N, _ = xcat.shape
    P = params["pj_w2"].shape[1]
    args = [xcat] + [params[k] for k in _PARAM_ORDER]
    return pl.pallas_call(
        _byol_fused_kernel,
        grid=(1,),
        out_shape=jax.ShapeDtypeStruct((N, 2 * P), jnp.float32),
        in_specs=[_full_spec(a.shape) for a in args],
        out_specs=_full_spec((N, 2 * P)),
        compiler_params=pltpu.CompilerParams(
            dimension_semantics=("arbitrary",)),
        # TODO(synk): at paper dims (hidden=2048, big batch) add a "parallel"
        # batch grid axis (v7x megacore) and tile the hidden dim for VMEM.
    )(*args)


def byol_forward(params, x1, x2):
    """Returns (p1, t1, p2, t2) matching the PyTorch module's forward()."""
    in_pad = params["enc_w"].shape[0]
    P = params["pj_w2"].shape[1]
    B = x1.shape[0]
    # Batch both views into one kernel launch (weights DMA'd once).
    xcat = jnp.concatenate([_flatten_pad(x1, in_pad), _flatten_pad(x2, in_pad)],
                           axis=0)
    out = byol_fused_call(params, xcat)
    p1, t1 = out[:B, :P], out[:B, P:]
    p2, t2 = out[B:, :P], out[B:, P:]
    return p1, t1, p2, t2


# ------------------------------ params / reference -------------------------- #

def init_params(key, in_dim, in_pad, enc_dim, hidden_dim, proj_dim):
    ks = jax.random.split(key, 10)

    def lin(kw, kb, din, dout, pad_to=None):
        scale = 1.0 / jnp.sqrt(jnp.float32(din))
        w = jax.random.uniform(kw, (din, dout), jnp.float32, -scale, scale)
        b = jax.random.uniform(kb, (dout,), jnp.float32, -scale, scale)
        if pad_to is not None and pad_to > din:
            w = jnp.pad(w, ((0, pad_to - din), (0, 0)))   # zero rows: padded x lanes add 0
        # Hoisted layout decisions: bf16 MXU weights, lane-dense (1, dout) f32 biases.
        return w.astype(jnp.bfloat16), b.reshape(1, dout).astype(jnp.float32)

    enc_w, enc_b = lin(ks[0], ks[1], in_dim, enc_dim, pad_to=in_pad)
    pj_w1, pj_b1 = lin(ks[2], ks[3], enc_dim, hidden_dim)
    pj_w2, pj_b2 = lin(ks[4], ks[5], hidden_dim, proj_dim)
    pr_w1, pr_b1 = lin(ks[6], ks[7], proj_dim, hidden_dim)
    pr_w2, pr_b2 = lin(ks[8], ks[9], hidden_dim, proj_dim)

    return {
        # shared encoder (online_encoder is the same object as target_encoder)
        "enc_w": enc_w, "enc_b": enc_b,
        # online projector
        "pj_w1": pj_w1, "pj_b1": pj_b1, "pj_w2": pj_w2, "pj_b2": pj_b2,
        # online predictor
        "pr_w1": pr_w1, "pr_b1": pr_b1, "pr_w2": pr_w2, "pr_b2": pr_b2,
        # target projector: copied from online projector at init
        "tj_w1": pj_w1, "tj_b1": pj_b1, "tj_w2": pj_w2, "tj_b2": pj_b2,
    }


def byol_forward_ref(params, x1, x2):
    """Pure-JAX reference mirroring the kernel math (bf16 MXU inputs, f32 accumulation)."""
    bf16 = jnp.bfloat16
    in_pad = params["enc_w"].shape[0]

    def linear(h, w, b):
        return jnp.dot(h.astype(bf16), w, preferred_element_type=jnp.float32) + b

    def mlp2(h, w1, b1, w2, b2):
        return linear(jnp.maximum(linear(h, w1, b1), 0.0).astype(bf16), w2, b2)

    def norm(v):
        return v * jax.lax.rsqrt(jnp.maximum(jnp.sum(v * v, axis=1, keepdims=True), 1e-24))

    def branch(x):
        xf = _flatten_pad(x, in_pad)
        f = jnp.maximum(linear(xf, params["enc_w"], params["enc_b"]), 0.0)
        o = mlp2(f, params["pj_w1"], params["pj_b1"], params["pj_w2"], params["pj_b2"])
        p = mlp2(o, params["pr_w1"], params["pr_b1"], params["pr_w2"], params["pr_b2"])
        t = mlp2(f, params["tj_w1"], params["tj_b1"], params["tj_w2"], params["tj_b2"])
        return norm(p), norm(t)

    p1, t1 = branch(x1)
    p2, t2 = branch(x2)
    return p1, t1, p2, t2


# ------------------------------------ main ----------------------------------- #

if __name__ == "__main__":
    # Dummy-input shape of the torch module: (B, 1, 30, 75).
    B, C, H, W = 2, 1, 30, 75
    in_dim = C * H * W                          # 2250
    in_pad = 128 * ((in_dim + 127) // 128)      # 2304 (18 * 128)
    enc_dim = 128                               # synthetic encoder output dim
    hidden_dim = 256                            # (2048 in the paper; small here)
    proj_dim = 128                              # paper value; keeps outputs lane-dense

    key = jax.random.PRNGKey(0)
    kp, k1, k2 = jax.random.split(key, 3)

    params = init_params(kp, in_dim, in_pad, enc_dim, hidden_dim, proj_dim)
    x1 = jax.random.normal(k1, (B, C, H, W), jnp.float32)
    x2 = jax.random.normal(k2, (B, C, H, W), jnp.float32)

    out = jax.jit(byol_forward)(params, x1, x2)
    out = jax.block_until_ready(out)

    ref = byol_forward_ref(params, x1, x2)
    for a, b in zip(out, ref):
        assert a.shape == (B, proj_dim), a.shape
        assert jnp.allclose(a, b, atol=1e-4, rtol=1e-4), \
            f"mismatch vs reference: {float(jnp.max(jnp.abs(a - b)))}"

    print("KERNEL_OK")
</pallas_src>

<mosaic_0001>
module attributes {stable_mosaic.version = 11 : i64} {
  func.func @_byol_fused_kernel(%arg0: i32, %arg1: memref<4x2304xbf16, #tpu.memory_space<vmem>>, %arg2: memref<2304x128xbf16, #tpu.memory_space<vmem>>, %arg3: memref<1x128xf32, #tpu.memory_space<vmem>>, %arg4: memref<128x256xbf16, #tpu.memory_space<vmem>>, %arg5: memref<1x256xf32, #tpu.memory_space<vmem>>, %arg6: memref<256x128xbf16, #tpu.memory_space<vmem>>, %arg7: memref<1x128xf32, #tpu.memory_space<vmem>>, %arg8: memref<128x256xbf16, #tpu.memory_space<vmem>>, %arg9: memref<1x256xf32, #tpu.memory_space<vmem>>, %arg10: memref<256x128xbf16, #tpu.memory_space<vmem>>, %arg11: memref<1x128xf32, #tpu.memory_space<vmem>>, %arg12: memref<128x256xbf16, #tpu.memory_space<vmem>>, %arg13: memref<1x256xf32, #tpu.memory_space<vmem>>, %arg14: memref<256x128xbf16, #tpu.memory_space<vmem>>, %arg15: memref<1x128xf32, #tpu.memory_space<vmem>>, %arg16: memref<4x256xf32, #tpu.memory_space<vmem>>) attributes {dimension_semantics = [#tpu.dimension_semantics<arbitrary>], iteration_bounds = array<i64: 1>, scalar_prefetch = 0 : i64, scratch_operands = 0 : i64, tpu.core_type = #tpu.core_type<tc>, window_params = [{pipeline_mode = #tpu.pipeline_mode<synchronous>, transform_indices = @transform_0, window_bounds = array<i64: 4, 2304>}, {pipeline_mode = #tpu.pipeline_mode<synchronous>, transform_indices = @transform_1, window_bounds = array<i64: 2304, 128>}, {pipeline_mode = #tpu.pipeline_mode<synchronous>, transform_indices = @transform_2, window_bounds = array<i64: 1, 128>}, {pipeline_mode = #tpu.pipeline_mode<synchronous>, transform_indices = @transform_3, window_bounds = array<i64: 128, 256>}, {pipeline_mode = #tpu.pipeline_mode<synchronous>, transform_indices = @transform_4, window_bounds = array<i64: 1, 256>}, {pipeline_mode = #tpu.pipeline_mode<synchronous>, transform_indices = @transform_5, window_bounds = array<i64: 256, 128>}, {pipeline_mode = #tpu.pipeline_mode<synchronous>, transform_indices = @transform_6, window_bounds = array<i64: 1, 128>}, {pipeline_mode = #tpu.pipeline_mode<synchronous>, transform_indices = @transform_7, window_bounds = array<i64: 128, 256>}, {pipeline_mode = #tpu.pipeline_mode<synchronous>, transform_indices = @transform_8, window_bounds = array<i64: 1, 256>}, {pipeline_mode = #tpu.pipeline_mode<synchronous>, transform_indices = @transform_9, window_bounds = array<i64: 256, 128>}, {pipeline_mode = #tpu.pipeline_mode<synchronous>, transform_indices = @transform_10, window_bounds = array<i64: 1, 128>}, {pipeline_mode = #tpu.pipeline_mode<synchronous>, transform_indices = @transform_11, window_bounds = array<i64: 128, 256>}, {pipeline_mode = #tpu.pipeline_mode<synchronous>, transform_indices = @transform_12, window_bounds = array<i64: 1, 256>}, {pipeline_mode = #tpu.pipeline_mode<synchronous>, transform_indices = @transform_13, window_bounds = array<i64: 256, 128>}, {pipeline_mode = #tpu.pipeline_mode<synchronous>, transform_indices = @transform_14, window_bounds = array<i64: 1, 128>}, {pipeline_mode = #tpu.pipeline_mode<synchronous>, transform_indices = @transform_15, window_bounds = array<i64: 4, 256>}]} {
    %c0 = arith.constant 0 : index
    %c0_0 = arith.constant 0 : index
    %0 = vector.load %arg1[%c0, %c0_0] : memref<4x2304xbf16, #tpu.memory_space<vmem>>, vector<4x2304xbf16>
    %c0_1 = arith.constant 0 : index
    %c0_2 = arith.constant 0 : index
    %1 = vector.load %arg2[%c0_1, %c0_2] : memref<2304x128xbf16, #tpu.memory_space<vmem>>, vector<2304x128xbf16>
    %cst = arith.constant dense<0.000000e+00> : vector<4x128xf32>
    %2 = tpu.matmul %0, %1, %cst {dimension_numbers = #tpu.dot_dimension_numbers<[1], [0], [0], [1], [0, 0, 1, 1], [], []>} : vector<4x2304xbf16>, vector<2304x128xbf16>, vector<4x128xf32> -> vector<4x128xf32>
    %c0_3 = arith.constant 0 : index
    %c0_4 = arith.constant 0 : index
    %3 = vector.load %arg3[%c0_3, %c0_4] : memref<1x128xf32, #tpu.memory_space<vmem>>, vector<1x128xf32>
    %4 = vector.broadcast %3 : vector<1x128xf32> to vector<4x128xf32>
    %5 = arith.addf %2, %4 : vector<4x128xf32>
    %cst_5 = arith.constant 0.000000e+00 : f32
    %6 = vector.broadcast %cst_5 : f32 to vector<4x128xf32>
    %7 = arith.maximumf %5, %6 : vector<4x128xf32>
    %8 = arith.truncf %7 : vector<4x128xf32> to vector<4x128xbf16>
    %c0_6 = arith.constant 0 : index
    %c0_7 = arith.constant 0 : index
    %9 = vector.load %arg4[%c0_6, %c0_7] : memref<128x256xbf16, #tpu.memory_space<vmem>>, vector<128x256xbf16>
    %cst_8 = arith.constant dense<0.000000e+00> : vector<4x256xf32>
    %10 = tpu.matmul %8, %9, %cst_8 {dimension_numbers = #tpu.dot_dimension_numbers<[1], [0], [0], [1], [0, 0, 1, 1], [], []>} : vector<4x128xbf16>, vector<128x256xbf16>, vector<4x256xf32> -> vector<4x256xf32>
    %c0_9 = arith.constant 0 : index
    %c0_10 = arith.constant 0 : index
    %11 = vector.load %arg5[%c0_9, %c0_10] : memref<1x256xf32, #tpu.memory_space<vmem>>, vector<1x256xf32>
    %12 = vector.broadcast %11 : vector<1x256xf32> to vector<4x256xf32>
    %13 = arith.addf %10, %12 : vector<4x256xf32>
    %cst_11 = arith.constant 0.000000e+00 : f32
    %14 = vector.broadcast %cst_11 : f32 to vector<4x256xf32>
    %15 = arith.maximumf %13, %14 : vector<4x256xf32>
    %16 = arith.truncf %15 : vector<4x256xf32> to vector<4x256xbf16>
    %c0_12 = arith.constant 0 : index
    %c0_13 = arith.constant 0 : index
    %17 = vector.load %arg6[%c0_12, %c0_13] : memref<256x128xbf16, #tpu.memory_space<vmem>>, vector<256x128xbf16>
    %cst_14 = arith.constant dense<0.000000e+00> : vector<4x128xf32>
    %18 = tpu.matmul %16, %17, %cst_14 {dimension_numbers = #tpu.dot_dimension_numbers<[1], [0], [0], [1], [0, 0, 1, 1], [], []>} : vector<4x256xbf16>, vector<256x128xbf16>, vector<4x128xf32> -> vector<4x128xf32>
    %c0_15 = arith.constant 0 : index
    %c0_16 = arith.constant 0 : index
    %19 = vector.load %arg7[%c0_15, %c0_16] : memref<1x128xf32, #tpu.memory_space<vmem>>, vector<1x128xf32>
    %20 = vector.broadcast %19 : vector<1x128xf32> to vector<4x128xf32>
    %21 = arith.addf %18, %20 : vector<4x128xf32>
    %22 = arith.truncf %21 : vector<4x128xf32> to vector<4x128xbf16>
    %c0_17 = arith.constant 0 : index
    %c0_18 = arith.constant 0 : index
    %23 = vector.load %arg8[%c0_17, %c0_18] : memref<128x256xbf16, #tpu.memory_space<vmem>>, vector<128x256xbf16>
    %cst_19 = arith.constant dense<0.000000e+00> : vector<4x256xf32>
    %24 = tpu.matmul %22, %23, %cst_19 {dimension_numbers = #tpu.dot_dimension_numbers<[1], [0], [0], [1], [0, 0, 1, 1], [], []>} : vector<4x128xbf16>, vector<128x256xbf16>, vector<4x256xf32> -> vector<4x256xf32>
    %c0_20 = arith.constant 0 : index
    %c0_21 = arith.constant 0 : index
    %25 = vector.load %arg9[%c0_20, %c0_21] : memref<1x256xf32, #tpu.memory_space<vmem>>, vector<1x256xf32>
    %26 = vector.broadcast %25 : vector<1x256xf32> to vector<4x256xf32>
    %27 = arith.addf %24, %26 : vector<4x256xf32>
    %cst_22 = arith.constant 0.000000e+00 : f32
    %28 = vector.broadcast %cst_22 : f32 to vector<4x256xf32>
    %29 = arith.maximumf %27, %28 : vector<4x256xf32>
    %30 = arith.truncf %29 : vector<4x256xf32> to vector<4x256xbf16>
    %c0_23 = arith.constant 0 : index
    %c0_24 = arith.constant 0 : index
    %31 = vector.load %arg10[%c0_23, %c0_24] : memref<256x128xbf16, #tpu.memory_space<vmem>>, vector<256x128xbf16>
    %cst_25 = arith.constant dense<0.000000e+00> : vector<4x128xf32>
    %32 = tpu.matmul %30, %31, %cst_25 {dimension_numbers = #tpu.dot_dimension_numbers<[1], [0], [0], [1], [0, 0, 1, 1], [], []>} : vector<4x256xbf16>, vector<256x128xbf16>, vector<4x128xf32> -> vector<4x128xf32>
    %c0_26 = arith.constant 0 : index
    %c0_27 = arith.constant 0 : index
    %33 = vector.load %arg11[%c0_26, %c0_27] : memref<1x128xf32, #tpu.memory_space<vmem>>, vector<1x128xf32>
    %34 = vector.broadcast %33 : vector<1x128xf32> to vector<4x128xf32>
    %35 = arith.addf %32, %34 : vector<4x128xf32>
    %c0_28 = arith.constant 0 : index
    %c0_29 = arith.constant 0 : index
    %36 = vector.load %arg12[%c0_28, %c0_29] : memref<128x256xbf16, #tpu.memory_space<vmem>>, vector<128x256xbf16>
    %cst_30 = arith.constant dense<0.000000e+00> : vector<4x256xf32>
    %37 = tpu.matmul %8, %36, %cst_30 {dimension_numbers = #tpu.dot_dimension_numbers<[1], [0], [0], [1], [0, 0, 1, 1], [], []>} : vector<4x128xbf16>, vector<128x256xbf16>, vector<4x256xf32> -> vector<4x256xf32>
    %c0_31 = arith.constant 0 : index
    %c0_32 = arith.constant 0 : index
    %38 = vector.load %arg13[%c0_31, %c0_32] : memref<1x256xf32, #tpu.memory_space<vmem>>, vector<1x256xf32>
    %39 = vector.broadcast %38 : vector<1x256xf32> to vector<4x256xf32>
    %40 = arith.addf %37, %39 : vector<4x256xf32>
    %cst_33 = arith.constant 0.000000e+00 : f32
    %41 = vector.broadcast %cst_33 : f32 to vector<4x256xf32>
    %42 = arith.maximumf %40, %41 : vector<4x256xf32>
    %43 = arith.truncf %42 : vector<4x256xf32> to vector<4x256xbf16>
    %c0_34 = arith.constant 0 : index
    %c0_35 = arith.constant 0 : index
    %44 = vector.load %arg14[%c0_34, %c0_35] : memref<256x128xbf16, #tpu.memory_space<vmem>>, vector<256x128xbf16>
    %cst_36 = arith.constant dense<0.000000e+00> : vector<4x128xf32>
    %45 = tpu.matmul %43, %44, %cst_36 {dimension_numbers = #tpu.dot_dimension_numbers<[1], [0], [0], [1], [0, 0, 1, 1], [], []>} : vector<4x256xbf16>, vector<256x128xbf16>, vector<4x128xf32> -> vector<4x128xf32>
    %c0_37 = arith.constant 0 : index
    %c0_38 = arith.constant 0 : index
    %46 = vector.load %arg15[%c0_37, %c0_38] : memref<1x128xf32, #tpu.memory_space<vmem>>, vector<1x128xf32>
    %47 = vector.broadcast %46 : vector<1x128xf32> to vector<4x128xf32>
    %48 = arith.addf %45, %47 : vector<4x128xf32>
    %49 = arith.mulf %35, %35 : vector<4x128xf32>
    %cst_39 = arith.constant dense<0.000000e+00> : vector<4xf32>
    %50 = vector.multi_reduction <add>, %49, %cst_39 [1] : vector<4x128xf32> to vector<4xf32>
    %51 = vector.shape_cast %50 : vector<4xf32> to vector<4x1xf32>
    %cst_40 = arith.constant 1.000000e-24 : f32
    %52 = vector.broadcast %cst_40 : f32 to vector<4x1xf32>
    %53 = arith.maximumf %51, %52 : vector<4x1xf32>
    %54 = math.rsqrt %53 : vector<4x1xf32>
    %55 = vector.broadcast %54 : vector<4x1xf32> to vector<4x128xf32>
    %56 = arith.mulf %35, %55 : vector<4x128xf32>
    %c0_41 = arith.constant 0 : index
    %c0_42 = arith.constant 0 : index
    %57 = vector.load %arg16[%c0_41, %c0_42] : memref<4x256xf32, #tpu.memory_space<vmem>>, vector<4x128xf32>
    tpu.vector_store %arg16[%c0_41, %c0_42], %56 {strides = array<i32>} : memref<4x256xf32, #tpu.memory_space<vmem>>, vector<4x128xf32>,
    %58 = arith.mulf %48, %48 : vector<4x128xf32>
    %cst_43 = arith.constant dense<0.000000e+00> : vector<4xf32>
    %59 = vector.multi_reduction <add>, %58, %cst_43 [1] : vector<4x128xf32> to vector<4xf32>
    %60 = vector.shape_cast %59 : vector<4xf32> to vector<4x1xf32>
    %cst_44 = arith.constant 1.000000e-24 : f32
    %61 = vector.broadcast %cst_44 : f32 to vector<4x1xf32>
    %62 = arith.maximumf %60, %61 : vector<4x1xf32>
    %63 = math.rsqrt %62 : vector<4x1xf32>
    %64 = vector.broadcast %63 : vector<4x1xf32> to vector<4x128xf32>
    %65 = arith.mulf %48, %64 : vector<4x128xf32>
    %c0_45 = arith.constant 0 : index
    %c128 = arith.constant 128 : index
    %66 = vector.load %arg16[%c0_45, %c128] : memref<4x256xf32, #tpu.memory_space<vmem>>, vector<4x128xf32>
    tpu.vector_store %arg16[%c0_45, %c128], %65 {strides = array<i32>} : memref<4x256xf32, #tpu.memory_space<vmem>>, vector<4x128xf32>,
    return
  }
  func.func @transform_0(%arg0: i32) -> (i32, i32) {
    %c0_i32 = arith.constant 0 : i32
    %c0_i32_0 = arith.constant 0 : i32
    %c0_i32_1 = arith.constant 0 : i32
    return %c0_i32, %c0_i32_0 : i32, i32
  }
  func.func @transform_1(%arg0: i32) -> (i32, i32) {
    %c0_i32 = arith.constant 0 : i32
    %c0_i32_0 = arith.constant 0 : i32
    %c0_i32_1 = arith.constant 0 : i32
    return %c0_i32, %c0_i32_0 : i32, i32
  }
  func.func @transform_2(%arg0: i32) -> (i32, i32) {
    %c0_i32 = arith.constant 0 : i32
    %c0_i32_0 = arith.constant 0 : i32
    %c0_i32_1 = arith.constant 0 : i32
    return %c0_i32, %c0_i32_0 : i32, i32
  }
  func.func @transform_3(%arg0: i32) -> (i32, i32) {
    %c0_i32 = arith.constant 0 : i32
    %c0_i32_0 = arith.constant 0 : i32
    %c0_i32_1 = arith.constant 0 : i32
    return %c0_i32, %c0_i32_0 : i32, i32
  }
  func.func @transform_4(%arg0: i32) -> (i32, i32) {
    %c0_i32 = arith.constant 0 : i32
    %c0_i32_0 = arith.constant 0 : i32
    %c0_i32_1 = arith.constant 0 : i32
    return %c0_i32, %c0_i32_0 : i32, i32
  }
  func.func @transform_5(%arg0: i32) -> (i32, i32) {
    %c0_i32 = arith.constant 0 : i32
    %c0_i32_0 = arith.constant 0 : i32
    %c0_i32_1 = arith.constant 0 : i32
    return %c0_i32, %c0_i32_0 : i32, i32
  }
  func.func @transform_6(%arg0: i32) -> (i32, i32) {
    %c0_i32 = arith.constant 0 : i32
    %c0_i32_0 = arith.constant 0 : i32
    %c0_i32_1 = arith.constant 0 : i32
    return %c0_i32, %c0_i32_0 : i32, i32
  }
  func.func @transform_7(%arg0: i32) -> (i32, i32) {
    %c0_i32 = arith.constant 0 : i32
    %c0_i32_0 = arith.constant 0 : i32
    %c0_i32_1 = arith.constant 0 : i32
    return %c0_i32, %c0_i32_0 : i32, i32
  }
  func.func @transform_8(%arg0: i32) -> (i32, i32) {
    %c0_i32 = arith.constant 0 : i32
    %c0_i32_0 = arith.constant 0 : i32
    %c0_i32_1 = arith.constant 0 : i32
    return %c0_i32, %c0_i32_0 : i32, i32
  }
  func.func @transform_9(%arg0: i32) -> (i32, i32) {
    %c0_i32 = arith.constant 0 : i32
    %c0_i32_0 = arith.constant 0 : i32
    %c0_i32_1 = arith.constant 0 : i32
    return %c0_i32, %c0_i32_0 : i32, i32
  }
  func.func @transform_10(%arg0: i32) -> (i32, i32) {
    %c0_i32 = arith.constant 0 : i32
    %c0_i32_0 = arith.constant 0 : i32
    %c0_i32_1 = arith.constant 0 : i32
    return %c0_i32, %c0_i32_0 : i32, i32
  }
  func.func @transform_11(%arg0: i32) -> (i32, i32) {
    %c0_i32 = arith.constant 0 : i32
    %c0_i32_0 = arith.constant 0 : i32
    %c0_i32_1 = arith.constant 0 : i32
    return %c0_i32, %c0_i32_0 : i32, i32
  }
  func.func @transform_12(%arg0: i32) -> (i32, i32) {
    %c0_i32 = arith.constant 0 : i32
    %c0_i32_0 = arith.constant 0 : i32
    %c0_i32_1 = arith.constant 0 : i32
    return %c0_i32, %c0_i32_0 : i32, i32
  }
  func.func @transform_13(%arg0: i32) -> (i32, i32) {
    %c0_i32 = arith.constant 0 : i32
    %c0_i32_0 = arith.constant 0 : i32
    %c0_i32_1 = arith.constant 0 : i32
    return %c0_i32, %c0_i32_0 : i32, i32
  }
  func.func @transform_14(%arg0: i32) -> (i32, i32) {
    %c0_i32 = arith.constant 0 : i32
    %c0_i32_0 = arith.constant 0 : i32
    %c0_i32_1 = arith.constant 0 : i32
    return %c0_i32, %c0_i32_0 : i32, i32
  }
  func.func @transform_15(%arg0: i32) -> (i32, i32) {
    %c0_i32 = arith.constant 0 : i32
    %c0_i32_0 = arith.constant 0 : i32
    %c0_i32_1 = arith.constant 0 : i32
    return %c0_i32, %c0_i32_0 : i32, i32
  }
}

</mosaic_0001>

<bundles_post_ra>
// kernel: byol_forward.1
= control target key start
LH: loop header
LB: loop body
LE: loop exit
PB: predicated region body
PF: predicated region fallthrough
CT: control target
= control target key end

     0   :  { %20 = vsyncpa [#allocation3], 0  ;;  %s4188_s0 = inlined_call_operand.vmem [shape: bf16[4,2304], index: 0, kind: input, shape index: {}]   ;;  %s4189_s1 = inlined_call_operand.hbm [shape: bf16[2304,128], index: 1, kind: input, shape index: {}]   ;;  %s4190_s2 = inlined_call_operand.hbm [shape: f32[1,128], index: 2, kind: input, shape index: {}]   ;;  %s4191_s3 = inlined_call_operand.vmem [shape: bf16[128,256], index: 3, kind: input, shape index: {}]   ;;  %s4192_s4 = inlined_call_operand.vmem [shape: f32[1,256], index: 4, kind: input, shape index: {}]   ;;  %s4193_s5 = inlined_call_operand.vmem [shape: bf16[256,128], index: 5, kind: input, shape index: {}]   ;;  %s4194_s6 = inlined_call_operand.hbm [shape: f32[1,128], index: 6, kind: input, shape index: {}]   ;;  %s4195_s7 = inlined_call_operand.vmem [shape: bf16[128,256], index: 7, kind: input, shape index: {}]   ;;  %s4196_s8 = inlined_call_operand.hbm [shape: f32[1,256], index: 8, kind: input, shape index: {}]   ;;  %s4197_s9 = inlined_call_operand.hbm [shape: bf16[256,128], index: 9, kind: input, shape index: {}]   ;;  %s4198_s10 = inlined_call_operand.hbm [shape: f32[1,128], index: 10, kind: input, shape index: {}]   ;;  %s4199_s11 = inlined_call_operand.hbm [shape: bf16[128,256], index: 11, kind: input, shape index: {}]   ;;  %s4200_s12 = inlined_call_operand.vmem [shape: f32[1,256], index: 12, kind: input, shape index: {}]   ;;  %s4201_s13 = inlined_call_operand.hbm [shape: bf16[256,128], index: 13, kind: input, shape index: {}]   ;;  %s4202_s14 = inlined_call_operand.vmem [shape: f32[1,128], index: 14, kind: input, shape index: {}]   ;;  %s4203_s15 = inlined_call_operand.vmem [shape: f32[4,256], index: 15, kind: output, shape index: {}]  }
   0x1   :  { %21 = vsyncpa [#allocation5], 0 }
   0x2   :  { %22 = vsyncpa [#allocation8], 0 }
   0x3   :  { %23 = vsyncpa [#allocation11], 0 }
   0x4   :  { %24 = vsyncpa [#allocation14], 0  ;;  %s3769_s18 = smov [#allocation4]   ;;  %s3770_s20 = smov [#allocation7]  }
   0x5   :  { %s45_s19 = sshll.u32 %s3769_s18, 4  ;;  %s73_s21 = sshll.u32 %s3770_s20, 4  ;;  %s46_s19 = int_to_ptr.vmem [resolvable:$true] %s45_s19  ;;  %s74_s21 = int_to_ptr.vmem [resolvable:$true] %s73_s21 }
   0x6   :  { %s3583_s24 = scalar_lea.hbm %s4190_s2, 16 }
   0x7   :  { %p3584_p0 = scmp.ne.s32.totalorder %s4190_s2, %s3583_s24  ;;  %p3587_p1 = scmp.lt.u32.totalorder %s3583_s24, %s4190_s2 }
   0x9   :  { %p3589_p2 = pnand %p3587_p1, %p3584_p0 }
   0xb   :  { %3592 = shalt.err (!%p3589_p2)
}
   0xc   :  { %s3593_s29 = scalar_lea.vmem %s46_s19, 16  ;;  %s3597_s30 = scalar_lea.vmem %s46_s19, 32 }
   0xd   :  { %p3594_p3 = scmp.ne.s32.totalorder %s46_s19, %s3593_s29  ;;  %p3598_p4 = scmp.lt.s32.totalorder %s46_s19, %s46_s19 }
   0xe   :  { %p3599_p5 = scmp.lt.s32.totalorder %s3597_s30, %s3593_s29 }
  0x10   :  { %p3600_p6 = por %p3599_p5, %p3598_p4 }
  0x12   :  { %p3601_p7 = pnand %p3600_p6, %p3594_p3 }
  0x14   :  { %3604 = shalt.err (!%p3601_p7)
}
  0x15   :  { %48 = dma.hbm_to_vmem [thread:$0]  %s4190_s2, 16, %s46_s19, [#allocation5]  }
  0x16   :  { %s3605_s22 = scalar_lea.hbm %s4196_s8, 32 }
  0x17   :  { %p3606_p8 = scmp.ne.s32.totalorder %s4196_s8, %s3605_s22  ;;  %p3609_p9 = scmp.lt.u32.totalorder %s3605_s22, %s4196_s8 }
  0x19   :  { %p3611_p10 = pnand %p3609_p9, %p3606_p8 }
  0x1b   :  { %3614 = shalt.err (!%p3611_p10)
}
  0x1c   :  { %s3615_s27 = scalar_lea.vmem %s74_s21, 32  ;;  %p3620_p12 = scmp.lt.s32.totalorder %s74_s21, %s74_s21 }
  0x1d   :  { %p3616_p11 = scmp.ne.s32.totalorder %s74_s21, %s3615_s27  ;;  %p3621_p13 = scmp.lt.s32.totalorder %s3615_s27, %s3615_s27 }
  0x1f   :  { %p3622_p0 = por %p3621_p13, %p3620_p12 }
  0x21   :  { %p3623_p1 = pnand %p3622_p0, %p3616_p11 }
  0x23   :  { %3626 = shalt.err (!%p3623_p1)
}
  0x24   :  { %76 = dma.hbm_to_vmem [thread:$0]  %s4196_s8, 32, %s74_s21, [#allocation8]  }
  0x25   :  { %s3771_s28 = smov [#allocation10]   ;;  %s3772_s30 = smov [#allocation2]  }
  0x26   :  { %s95_s29 = sshll.u32 %s3771_s28, 4  ;;  %s32_s16 = sshll.u32 %s3772_s30, 4  ;;  %s96_s29 = int_to_ptr.vmem [resolvable:$true] %s95_s29  ;;  %s3887_s16 = int_to_ptr.vmem [resolvable:$true] %s32_s16 }
  0x27   :  { %s3627_s20 = scalar_lea.hbm %s4198_s10, 16 }
  0x28   :  { %p3628_p2 = scmp.ne.s32.totalorder %s4198_s10, %s3627_s20  ;;  %p3631_p3 = scmp.lt.u32.totalorder %s3627_s20, %s4198_s10 }
  0x2a   :  { %p3633_p4 = pnand %p3631_p3, %p3628_p2 }
  0x2c   :  { %3636 = shalt.err (!%p3633_p4)
}
  0x2d   :  { %s3637_s8 = scalar_lea.vmem %s96_s29, 16  ;;  %s3641_s21 = scalar_lea.vmem %s96_s29, 32 }
  0x2e   :  { %p3638_p5 = scmp.ne.s32.totalorder %s96_s29, %s3637_s8  ;;  %p3642_p6 = scmp.lt.s32.totalorder %s96_s29, %s96_s29 }
  0x2f   :  { %p3643_p7 = scmp.lt.s32.totalorder %s3641_s21, %s3637_s8 }
  0x31   :  { %p3644_p8 = por %p3643_p7, %p3642_p6 }
  0x33   :  { %p3645_p9 = pnand %p3644_p8, %p3638_p5 }
  0x35   :  { %3648 = shalt.err (!%p3645_p9)
}
  0x36   :  { %98 = dma.hbm_to_vmem [thread:$0]  %s4198_s10, 16, %s96_s29, [#allocation11]  }
  0x37   :  { %s3649_s28 = scalar_lea.hbm %s4189_s1, 18432 }
  0x38   :  { %p3650_p10 = scmp.ne.s32.totalorder %s4189_s1, %s3649_s28  ;;  %p3653_p11 = scmp.lt.u32.totalorder %s3649_s28, %s4189_s1 }
  0x3a   :  { %p3655_p12 = pnand %p3653_p11, %p3650_p10 }
  0x3c   :  { %3658 = shalt.err (!%p3655_p12)
}
  0x3d   :  { %s3659_s22 = scalar_lea.vmem %s3887_s16, 18432  ;;  %p3664_p0 = scmp.lt.s32.totalorder %s3887_s16, %s3887_s16 }
  0x3e   :  { %p3660_p13 = scmp.ne.s32.totalorder %s3887_s16, %s3659_s22  ;;  %p3665_p1 = scmp.lt.s32.totalorder %s3659_s22, %s3659_s22 }
  0x40   :  { %p3666_p2 = por %p3665_p1, %p3664_p0 }
  0x42   :  { %p3667_p3 = pnand %p3666_p2, %p3660_p13 }
  0x44   :  { %3670 = shalt.err (!%p3667_p3)
}
  0x45   :  { %s3773_s10 = smov 64   ;;  %s3774_s29 = smov 4  }
  0x46   :  { %38 = dma.hbm_to_vmem [thread:$0]  %s4189_s1, 18432, %s3887_s16, [#allocation3], %s3773_s10, %s3773_s10, %s3774_s29  }
  0x47   :  { %s3775_s25 = smov [#allocation6]   ;;  %s3776_s21 = smov [#allocation9]  }
  0x48   :  { %s61_s8 = sshll.u32 %s3775_s25, 4  ;;  %s82_s26 = sshll.u32 %s3776_s21, 4  ;;  %s62_s8 = int_to_ptr.vmem [resolvable:$true] %s61_s8  ;;  %s3921_s26 = int_to_ptr.vmem [resolvable:$true] %s82_s26 }
  0x49   :  { %s3671_s19 = scalar_lea.hbm %s4194_s6, 16 }
  0x4a   :  { %p3672_p4 = scmp.ne.s32.totalorder %s4194_s6, %s3671_s19  ;;  %p3675_p5 = scmp.lt.u32.totalorder %s3671_s19, %s4194_s6 }
  0x4c   :  { %p3677_p6 = pnand %p3675_p5, %p3672_p4 }
  0x4e   :  { %3680 = shalt.err (!%p3677_p6)
}
  0x4f   :  { %s3681_s1 = scalar_lea.vmem %s62_s8, 16  ;;  %s3685_s16 = scalar_lea.vmem %s62_s8, 32 }
  0x50   :  { %p3682_p7 = scmp.ne.s32.totalorder %s62_s8, %s3681_s1  ;;  %p3686_p8 = scmp.lt.s32.totalorder %s62_s8, %s62_s8 }
  0x51   :  { %p3687_p9 = scmp.lt.s32.totalorder %s3685_s16, %s3681_s1 }
  0x53   :  { %p3688_p10 = por %p3687_p9, %p3686_p8 }
  0x55   :  { %p3689_p11 = pnand %p3688_p10, %p3682_p7 }
  0x57   :  { %3692 = shalt.err (!%p3689_p11)
}
  0x58   :  { %64 = dma.hbm_to_vmem [thread:$0]  %s4194_s6, 16, %s62_s8, [#allocation5]  }
  0x59   :  { %s3693_s25 = scalar_lea.hbm %s4197_s9, 2048 }
  0x5a   :  { %p3694_p12 = scmp.ne.s32.totalorder %s4197_s9, %s3693_s25  ;;  %p3697_p13 = scmp.lt.u32.totalorder %s3693_s25, %s4197_s9 }
  0x5c   :  { %p3699_p0 = pnand %p3697_p13, %p3694_p12 }
  0x5e   :  { %3702 = shalt.err (!%p3699_p0)
}
  0x5f   :  { %s3703_s28 = scalar_lea.vmem %s3921_s26, 2048  ;;  %p3708_p2 = scmp.lt.s32.totalorder %s3921_s26, %s3921_s26 }
  0x60   :  { %p3704_p1 = scmp.ne.s32.totalorder %s3921_s26, %s3703_s28  ;;  %p3709_p3 = scmp.lt.s32.totalorder %s3703_s28, %s3703_s28 }
  0x62   :  { %p3710_p4 = por %p3709_p3, %p3708_p2 }
  0x64   :  { %p3711_p5 = pnand %p3710_p4, %p3704_p1 }
  0x66   :  { %3714 = shalt.err (!%p3711_p5)
}
  0x67   :  { %88 = dma.hbm_to_vmem [thread:$0]  %s4197_s9, 2048, %s3921_s26, [#allocation8], %s3773_s10, %s3773_s10, %s3774_s29  }
  0x68   :  { %s3777_s30 = smov [#allocation12]   ;;  %s3715_s16 = scalar_lea.hbm %s4199_s11, 2048 }
  0x69   :  { %s104_s17 = sshll.u32 %s3777_s30, 4  ;;  %p3716_p6 = scmp.ne.s32.totalorder %s4199_s11, %s3715_s16  ;;  %s105_s17 = int_to_ptr.vmem [resolvable:$true] %s104_s17 }
  0x6a   :  { %p3719_p7 = scmp.lt.u32.totalorder %s3715_s16, %s4199_s11 }
  0x6c   :  { %p3721_p8 = pnand %p3719_p7, %p3716_p6 }
  0x6e   :  { %3724 = shalt.err (!%p3721_p8)
}
  0x6f   :  { %s3725_s25 = scalar_lea.vmem %s105_s17, 2048  ;;  %p3730_p10 = scmp.lt.s32.totalorder %s105_s17, %s105_s17 }
  0x70   :  { %p3726_p9 = scmp.ne.s32.totalorder %s105_s17, %s3725_s25  ;;  %p3731_p11 = scmp.lt.s32.totalorder %s3725_s25, %s3725_s25 }
  0x72   :  { %p3732_p12 = por %p3731_p11, %p3730_p10 }
  0x74   :  { %p3733_p13 = pnand %p3732_p12, %p3726_p9 }
  0x76   :  { %3736 = shalt.err (!%p3733_p13)
}
  0x77   :  { %s3778_s9 = smov 128   ;;  %s3779_s26 = smov 8  }
  0x78   :  { %110 = dma.hbm_to_vmem [thread:$0]  %s4199_s11, 2048, %s105_s17, [#allocation11], %s3778_s9, %s3778_s9, %s3779_s26  }
  0x79   :  { %s3780_s2 = smov [#allocation13]   ;;  %s3737_s8 = scalar_lea.hbm %s4201_s13, 2048 }
  0x7a   :  { %s118_s19 = sshll.u32 %s3780_s2, 4  ;;  %p3738_p0 = scmp.ne.s32.totalorder %s4201_s13, %s3737_s8  ;;  %s119_s19 = int_to_ptr.vmem [resolvable:$true] %s118_s19 }
  0x7b   :  { %p3741_p1 = scmp.lt.u32.totalorder %s3737_s8, %s4201_s13 }
  0x7d   :  { %p3743_p2 = pnand %p3741_p1, %p3738_p0 }
  0x7f   :  { %3746 = shalt.err (!%p3743_p2)
}
  0x80   :  { %s3747_s20 = scalar_lea.vmem %s119_s19, 2048  ;;  %p3752_p4 = scmp.lt.s32.totalorder %s119_s19, %s119_s19 }
  0x81   :  { %p3748_p3 = scmp.ne.s32.totalorder %s119_s19, %s3747_s20  ;;  %p3753_p5 = scmp.lt.s32.totalorder %s3747_s20, %s3747_s20 }
  0x83   :  { %p3754_p6 = por %p3753_p5, %p3752_p4 }
  0x85   :  { %p3755_p7 = pnand %p3754_p6, %p3748_p3 }
  0x87   :  { %3758 = shalt.err (!%p3755_p7)
}
  0x88   :  { %124 = dma.hbm_to_vmem [thread:$0]  %s4201_s13, 2048, %s119_s19, [#allocation14], %s3773_s10, %s3773_s10, %s3774_s29  }
  0x89   :  { %3759 = dma.done.wait [#allocation3], 18432  }
  0x8a   :  { %3760 = vsyncadd [#allocation3], 4294948864 }
  0x8b   :  { %3761 = dma.done.wait [#allocation5], 32  }
  0x8c   :  { %3762 = vsyncadd [#allocation5], 4294967264 }
  0x8d   :  { %3763 = dma.done.wait [#allocation8], 2080  }
  0x8e   :  { %3764 = vsyncadd [#allocation8], 4294965216 }
  0x8f   :  { %3765 = dma.done.wait [#allocation11], 2064  }
  0x90   :  { %3766 = vsyncadd [#allocation11], 4294965232 }
  0x91   :  { %3767 = dma.done.wait [#allocation14], 2048  }
  0x92   :  { %3768 = vsyncadd [#allocation14], 4294965248  ;;  %v3311_v0 = vld [vmem:[#allocation2 + $0x40] sm:$0xff]   ;;  %v3315_v4 = vld [vmem:[#allocation2 + $0x48] sm:$0xff]   ;;  %v3781_v21 = vmov 1983009808   ;;  %v461_v23 = vlaneseq }
  0x93   :  { %v3312_v1 = vld [vmem:[#allocation2] sm:$0xff]   ;;  %3033 = vmatprep.subr.bf16.mxu0 %v3311_v0  ;;  %v3316_v5 = vld [vmem:[#allocation2 + $0x8] sm:$0xff]   ;;  %v3319_v8 = vld [vmem:[#allocation2 + $0x50] sm:$0xff]   ;;  %v459_v22 = vunpack.c.l.s4 %v3781_v21  ;;  %vm2763_vm0 = vcmask 1043456  }
  0x94   :  { %v3313_v2 = vld [vmem:[#allocation2 + $0xc0] sm:$0xff]   ;;  %3034 = vmatpush3.bf16.msra.mxu0 %v3312_v1  ;;  %v3317_v6 = vld [vmem:[#allocation2 + $0xc8] sm:$0xff]   ;;  %v3320_v9 = vld [vmem:[#allocation2 + $0x10] sm:$0xff]   ;;  %v3982_v29 = vshrl.u32 %v461_v23, 7 }
  0x95   :  { %v3314_v3 = vld [vmem:[#allocation2 + $0x80] sm:$0xff]   ;;  %3055 = vmatprep.subr.bf16.mxu1 %v3313_v2  ;;  %3035 = vmatprep.subr.bf16.mxu0 %v3315_v4  ;;  %v3318_v7 = vld [vmem:[#allocation2 + $0x88] sm:$0xff]   ;;  %v3321_v10 = vld [vmem:[#allocation2 + $0xd0] sm:$0xff]   ;;  %v460_v28 = vunpack.c.0.s8 %v459_v22 }
  0x96   :  { %3056 = vmatpush3.bf16.msra.mxu1 %v3314_v3  ;;  %v3322_v11 = vld [vmem:[#allocation2 + $0x90] sm:$0xff]   ;;  %v3323_v12 = vld [vmem:[#allocation2 + $0x58] sm:$0xff]   ;;  %v3327_v16 = vld [vmem:[#allocation2 + $0x60] sm:$0xff]  }
  0x97   :  { %3057 = vmatprep.subr.bf16.mxu1 %v3317_v6  ;;  %v3324_v13 = vld [vmem:[#allocation2 + $0x18] sm:$0xff]   ;;  %v3328_v17 = vld [vmem:[#allocation2 + $0x20] sm:$0xff]   ;;  %v3331_v20 = vld [vmem:[#allocation2 + $0x68] sm:$0xff]   ;;  %v3985_v34 = vsub.s32 %v460_v28, %v3982_v29 }
  0x98   :  { %3036 = vmatpush3.bf16.msra.mxu0 %v3316_v5  ;;  %v3325_v14 = vld [vmem:[#allocation2 + $0xd8] sm:$0xff]   ;;  %v3329_v18 = vld [vmem:[#allocation2 + $0xe0] sm:$0xff]   ;;  %v3332_v24 = vld [vmem:[#allocation2 + $0x28] sm:$0xff]  }
  0x99   :  { %3037 = vmatprep.subr.bf16.mxu0 %v3319_v8  ;;  %v3326_v15 = vld [vmem:[#allocation2 + $0x98] sm:$0xff]   ;;  %v3330_v19 = vld [vmem:[#allocation2 + $0xa0] sm:$0xff]   ;;  %v3333_v25 = vld [vmem:[#allocation2 + $0xe8] sm:$0xff]  }
  0x9a   :  { %3058 = vmatpush3.bf16.msra.mxu1 %v3318_v7  ;;  %v3334_v26 = vld [vmem:[#allocation2 + $0xa8] sm:$0xff]   ;;  %v3335_v27 = vld [vmem:[#allocation2 + $0x70] sm:$0xff]   ;;  %v3339_v33 = vld [vmem:[#allocation2 + $0x78] sm:$0xff]  }
  0x9b   :  { %3059 = vmatprep.subr.bf16.mxu1 %v3321_v10  ;;  %v3336_v30 = vld [vmem:[#allocation2 + $0x30] sm:$0xff]   ;;  %v3340_v35 = vld [vmem:[#allocation2 + $0x38] sm:$0xff]   ;;  %v152_v37 = vld [vmem:[%s4188_s0] sm:$0xff] }
  0x9c   :  { %3038 = vmatpush3.bf16.msra.mxu0 %v3320_v9  ;;  %v3337_v31 = vld [vmem:[#allocation2 + $0xf0] sm:$0xff]   ;;  %v3341_v36 = vld [vmem:[#allocation2 + $0xf8] sm:$0xff]   ;;  %v464_v38 = vrot.slane %v152_v37, %v3985_v34  ;;  %v457_v40 = vcombine.high %v152_v37, %v152_v37  ;;  %v3343_v41 = vld [vmem:[#allocation2 + $0x140] sm:$0xff]  }
  0x9d   :  { %3039 = vmatprep.subr.bf16.mxu0 %v3323_v12  ;;  %v3338_v32 = vld [vmem:[#allocation2 + $0xb0] sm:$0xff]   ;;  %v3342_v39 = vld [vmem:[#allocation2 + $0xb8] sm:$0xff]   ;;  %v3345_v44 = vld [vmem:[#allocation2 + $0x100] sm:$0xff]  }
  0x9e   :  { %3060 = vmatpush3.bf16.msra.mxu1 %v3322_v11  ;;  %v472_v42 = vcombine.high %v464_v38, %v464_v38  ;;  %v471_v43 = vrot.slane %v457_v40, %v3985_v34  ;;  %v3346_v45 = vld [vmem:[#allocation2 + $0x1c0] sm:$0xff]   ;;  %v3348_v48 = vld [vmem:[#allocation2 + $0x148] sm:$0xff]   ;;  %v3352_v52 = vld [vmem:[#allocation2 + $0x150] sm:$0xff]  }
  0x9f   :  { %3061 = vmatprep.subr.bf16.mxu1 %v3325_v14  ;;  %v3347_v47 = vld [vmem:[#allocation2 + $0x180] sm:$0xff]   ;;  %v3349_v49 = vld [vmem:[#allocation2 + $0x108] sm:$0xff]   ;;  %v3353_v53 = vld [vmem:[#allocation2 + $0x110] sm:$0xff]  }
  0xa0   :  { %3040 = vmatpush3.bf16.msra.mxu0 %v3324_v13  ;;  %1447 = vmatprep.mubr.bf16.mxu0 %v472_v42  ;;  %v473_v46 = vcombine.high %v471_v43, %v471_v43  ;;  %v3350_v50 = vld [vmem:[#allocation2 + $0x1c8] sm:$0xff]   ;;  %v3354_v54 = vld [vmem:[#allocation2 + $0x1d0] sm:$0xff]   ;;  %v3356_v56 = vld [vmem:[#allocation2 + $0x158] sm:$0xff]  }
  0xa1   :  { %3041 = vmatprep.subr.bf16.mxu0 %v3327_v16  ;;  %v3351_v51 = vld [vmem:[#allocation2 + $0x188] sm:$0xff]   ;;  %v3355_v55 = vld [vmem:[#allocation2 + $0x190] sm:$0xff]   ;;  %v3357_v57 = vld [vmem:[#allocation2 + $0x118] sm:$0xff]  }
  0xa2   :  { %3062 = vmatpush3.bf16.msra.mxu1 %v3326_v15  ;;  %1487 = vmatprep.mubr.bf16.mxu1 %v473_v46  ;;  %v3358_v58 = vld [vmem:[#allocation2 + $0x1d8] sm:$0xff]   ;;  %v3360_v60 = vld [vmem:[#allocation2 + $0x160] sm:$0xff]   ;;  %v3364_v0 = vld [vmem:[#allocation2 + $0x168] sm:$0xff]  }
  0xa3   :  { %3063 = vmatprep.subr.bf16.mxu1 %v3329_v18  ;;  %v3359_v59 = vld [vmem:[#allocation2 + $0x198] sm:$0xff]   ;;  %v3361_v61 = vld [vmem:[#allocation2 + $0x120] sm:$0xff]   ;;  %v3365_v1 = vld [vmem:[#allocation2 + $0x128] sm:$0xff]  }
  0xa4   :  { %3042 = vmatpush3.bf16.msra.mxu0 %v3328_v17  ;;  %v3362_v62 = vld [vmem:[#allocation2 + $0x1e0] sm:$0xff]   ;;  %v3366_v2 = vld [vmem:[#allocation2 + $0x1e8] sm:$0xff]   ;;  %v3368_v4 = vld [vmem:[#allocation2 + $0x170] sm:$0xff]  }
  0xa5   :  { %3043 = vmatprep.subr.bf16.mxu0 %v3331_v20  ;;  %v3363_v63 = vld [vmem:[#allocation2 + $0x1a0] sm:$0xff]   ;;  %v3367_v3 = vld [vmem:[#allocation2 + $0x1a8] sm:$0xff]   ;;  %v3369_v5 = vld [vmem:[#allocation2 + $0x130] sm:$0xff]  }
  0xa6   :  { %3064 = vmatpush3.bf16.msra.mxu1 %v3330_v19  ;;  %v3370_v6 = vld [vmem:[#allocation2 + $0x1f0] sm:$0xff]   ;;  %v3372_v8 = vld [vmem:[#allocation2 + $0x178] sm:$0xff]   ;;  %v153_v11 = vld [vmem:[%s4188_s0 + $0x8] sm:$0xff] }
  0xa7   :  { %3065 = vmatprep.subr.bf16.mxu1 %v3333_v25  ;;  %v3371_v7 = vld [vmem:[#allocation2 + $0x1b0] sm:$0xff]   ;;  %v3373_v9 = vld [vmem:[#allocation2 + $0x138] sm:$0xff]   ;;  %v481_v12 = vrot.slane %v153_v11, %v3985_v34  ;;  %v474_v14 = vcombine.high %v153_v11, %v153_v11  ;;  %v3376_v15 = vld [vmem:[#allocation2 + $0x240] sm:$0xff]  }
  0xa8   :  { %3044 = vmatpush3.bf16.msra.mxu0 %v3332_v24  ;;  %v3374_v10 = vld [vmem:[#allocation2 + $0x1f8] sm:$0xff]   ;;  %v3378_v18 = vld [vmem:[#allocation2 + $0x200] sm:$0xff]   ;;  %v3381_v22 = vld [vmem:[#allocation2 + $0x248] sm:$0xff]  }
  0xa9   :  { %3045 = vmatprep.subr.bf16.mxu0 %v3335_v27  ;;  %v3375_v13 = vld [vmem:[#allocation2 + $0x1b8] sm:$0xff]   ;;  %v489_v16 = vcombine.high %v481_v12, %v481_v12  ;;  %v488_v17 = vrot.slane %v474_v14, %v3985_v34  ;;  %v3379_v19 = vld [vmem:[#allocation2 + $0x2c0] sm:$0xff]   ;;  %v3382_v23 = vld [vmem:[#allocation2 + $0x208] sm:$0xff]  }
  0xaa   :  { %3066 = vmatpush3.bf16.msra.mxu1 %v3334_v26  ;;  %v3380_v21 = vld [vmem:[#allocation2 + $0x280] sm:$0xff]   ;;  %v3383_v24 = vld [vmem:[#allocation2 + $0x2c8] sm:$0xff]   ;;  %v3385_v26 = vld [vmem:[#allocation2 + $0x250] sm:$0xff]  }
  0xab   :  { %3067 = vmatprep.subr.bf16.mxu1 %v3337_v31  ;;  %v490_v20 = vcombine.high %v488_v17, %v488_v17  ;;  %v3384_v25 = vld [vmem:[#allocation2 + $0x288] sm:$0xff]   ;;  %v3386_v27 = vld [vmem:[#allocation2 + $0x210] sm:$0xff]   ;;  %v3389_v31 = vld [vmem:[#allocation2 + $0x258] sm:$0xff]  }
  0xac   :  { %3046 = vmatpush3.bf16.msra.mxu0 %v3336_v30  ;;  %v3387_v28 = vld [vmem:[#allocation2 + $0x2d0] sm:$0xff]   ;;  %v3394_v37 = vld [vmem:[#allocation2 + $0x220] sm:$0xff]   ;;  %v3397_v40 = vld [vmem:[#allocation2 + $0x268] sm:$0xff]  }
  0xad   :  { %3047 = vmatprep.subr.bf16.mxu0 %v3339_v33  ;;  %v3388_v30 = vld [vmem:[#allocation2 + $0x290] sm:$0xff]   ;;  %v3391_v33 = vld [vmem:[#allocation2 + $0x2d8] sm:$0xff]   ;;  %v3399_v42 = vld [vmem:[#allocation2 + $0x2e8] sm:$0xff]  }
  0xae   :  { %3068 = vmatpush3.bf16.msra.mxu1 %v3338_v32  ;;  %v3390_v32 = vld [vmem:[#allocation2 + $0x218] sm:$0xff]   ;;  %v3403_v46 = vld [vmem:[#allocation2 + $0x2f0] sm:$0xff]   ;;  %v3427_v11 = vld [vmem:[#allocation2 + $0x320] sm:$0xff]  }
  0xaf   :  { %3069 = vmatprep.subr.bf16.mxu1 %v3341_v36  ;;  %v3393_v36 = vld [vmem:[#allocation2 + $0x260] sm:$0xff]   ;;  %v3430_v14 = vld [vmem:[#allocation2 + $0x368] sm:$0xff]  }
  0xb0   :  { %3048 = vmatpush3.bf16.msra.mxu0 %v3340_v35  ;;  %v3392_v35 = vld [vmem:[#allocation2 + $0x298] sm:$0xff]  }
  0xb1   :  { %3077 = vmatprep.subr.bf16.mxu0 %v3343_v41  ;;  %v3398_v41 = vld [vmem:[#allocation2 + $0x228] sm:$0xff]  }
  0xb2   :  { %3070 = vmatpush3.bf16.msra.mxu1 %v3342_v39  ;;  %v3396_v39 = vld [vmem:[#allocation2 + $0x2a0] sm:$0xff]  }
  0xb3   :  { %1448 = vmatmul.mubr.bf16.vlgmr.msra.gmra.mrb[0].mxu0 %v464_v38  ;;  %3099 = vmatprep.subr.bf16.mxu1 %v3346_v45  ;;  %v3395_v38 = vld [vmem:[#allocation2 + $0x2e0] sm:$0xff]   ;;  %v3402_v45 = vld [vmem:[#allocation2 + $0x230] sm:$0xff]  }
  0xb4   :  { %3078 = vmatpush3.bf16.msra.mxu0 %v3345_v44  ;;  %1527 = vmatprep.mubr.bf16.mxu0 %v489_v16  ;;  %v3401_v44 = vld [vmem:[#allocation2 + $0x270] sm:$0xff]   ;;  %v3432_v16 = vld [vmem:[#allocation2 + $0x3e8] sm:$0xff]  }
  0xb5   :  { %1488 = vmatmul.mubr.bf16.vlgmr.msra.gmra.mrb[0].mxu1 %v471_v43  ;;  %3079 = vmatprep.subr.bf16.mxu0 %v3348_v48  ;;  %v3400_v43 = vld [vmem:[#allocation2 + $0x2a8] sm:$0xff]   ;;  %v3405_v48 = vld [vmem:[#allocation2 + $0x278] sm:$0xff]  }
  0xb6   :  { %3100 = vmatpush3.bf16.msra.mxu1 %v3347_v47  ;;  %1567 = vmatprep.mubr.bf16.mxu1 %v490_v20  ;;  %v3404_v47 = vld [vmem:[#allocation2 + $0x2b0] sm:$0xff]  }
  0xb7   :  { %3101 = vmatprep.subr.bf16.mxu1 %v3350_v50  ;;  %v3407_v50 = vld [vmem:[#allocation2 + $0x2f8] sm:$0xff]   ;;  %v3436_v20 = vld [vmem:[#allocation2 + $0x3f0] sm:$0xff]  }
  0xb8   :  { %3080 = vmatpush3.bf16.msra.mxu0 %v3349_v49  ;;  %v3406_v49 = vld [vmem:[#allocation2 + $0x238] sm:$0xff]  }
  0xb9   :  { %3081 = vmatprep.subr.bf16.mxu0 %v3352_v52 }
  0xba   :  { %3102 = vmatpush3.bf16.msra.mxu1 %v3351_v51  ;;  %v154_v51 = vld [vmem:[%s4188_s0 + $0x10] sm:$0xff] }
  0xbb   :  { %3103 = vmatprep.subr.bf16.mxu1 %v3354_v54  ;;  %v498_v52 = vrot.slane %v154_v51, %v3985_v34  ;;  %v491_v54 = vcombine.high %v154_v51, %v154_v51  ;;  %v3459_v51 = vld [vmem:[%s4191_s3] ss:$8 sps:$4 sm:$0xff]  }
  0xbc   :  { %3082 = vmatpush3.bf16.msra.mxu0 %v3353_v53  ;;  %v3408_v53 = vld [vmem:[#allocation2 + $0x2b8] sm:$0xff]  }
  0xbd   :  { %3083 = vmatprep.subr.bf16.mxu0 %v3356_v56  ;;  %v506_v56 = vcombine.high %v498_v52, %v498_v52 }
  0xbe   :  { %3104 = vmatpush3.bf16.msra.mxu1 %v3355_v55  ;;  %v3409_v55 = vld [vmem:[#allocation2 + $0x340] sm:$0xff]  }
  0xbf   :  { %3105 = vmatprep.subr.bf16.mxu1 %v3358_v58  ;;  %v3411_v58 = vld [vmem:[#allocation2 + $0x300] sm:$0xff]  }
  0xc0   :  { %3084 = vmatpush3.bf16.msra.mxu0 %v3357_v57  ;;  %v505_v57 = vrot.slane %v491_v54, %v3985_v34  ;;  %v3462_v54 = vld [vmem:[%s4191_s3 + $0x10] ss:$8 sps:$4 sm:$0xff]  }
  0xc1   :  { %3085 = vmatprep.subr.bf16.mxu0 %v3360_v60 }
  0xc2   :  { %3106 = vmatpush3.bf16.msra.mxu1 %v3359_v59  ;;  %v3412_v59 = vld [vmem:[#allocation2 + $0x3c0] sm:$0xff]   ;;  %v507_v60 = vcombine.high %v505_v57, %v505_v57 }
  0xc3   :  { %3107 = vmatprep.subr.bf16.mxu1 %v3362_v62  ;;  %v3414_v62 = vld [vmem:[#allocation2 + $0x348] sm:$0xff]  }
  0xc4   :  { %3086 = vmatpush3.bf16.msra.mxu0 %v3361_v61  ;;  %v3413_v61 = vld [vmem:[#allocation2 + $0x380] sm:$0xff]  }
  0xc5   :  { %3087 = vmatprep.subr.bf16.mxu0 %v3364_v0  ;;  %v3416_v0 = vld [vmem:[#allocation2 + $0x3c8] sm:$0xff]  }
  0xc6   :  { %3108 = vmatpush3.bf16.msra.mxu1 %v3363_v63  ;;  %v3415_v63 = vld [vmem:[#allocation2 + $0x308] sm:$0xff]  }
  0xc7   :  { %3109 = vmatprep.subr.bf16.mxu1 %v3366_v2  ;;  %v3418_v2 = vld [vmem:[#allocation2 + $0x350] sm:$0xff]  }
  0xc8   :  { %3088 = vmatpush3.bf16.msra.mxu0 %v3365_v1  ;;  %v3417_v1 = vld [vmem:[#allocation2 + $0x388] sm:$0xff]  }
  0xc9   :  { %3089 = vmatprep.subr.bf16.mxu0 %v3368_v4  ;;  %v3420_v4 = vld [vmem:[#allocation2 + $0x3d0] sm:$0xff]  }
  0xca   :  { %3110 = vmatpush3.bf16.msra.mxu1 %v3367_v3  ;;  %v3419_v3 = vld [vmem:[#allocation2 + $0x310] sm:$0xff]  }
  0xcb   :  { %3111 = vmatprep.subr.bf16.mxu1 %v3370_v6  ;;  %v3422_v6 = vld [vmem:[#allocation2 + $0x358] sm:$0xff]  }
  0xcc   :  { %3090 = vmatpush3.bf16.msra.mxu0 %v3369_v5  ;;  %v3421_v5 = vld [vmem:[#allocation2 + $0x390] sm:$0xff]  }
  0xcd   :  { %3091 = vmatprep.subr.bf16.mxu0 %v3372_v8  ;;  %v3424_v8 = vld [vmem:[#allocation2 + $0x3d8] sm:$0xff]  }
  0xce   :  { %3112 = vmatpush3.bf16.msra.mxu1 %v3371_v7  ;;  %v3423_v7 = vld [vmem:[#allocation2 + $0x318] sm:$0xff]  }
  0xcf   :  { %3113 = vmatprep.subr.bf16.mxu1 %v3374_v10  ;;  %v3426_v10 = vld [vmem:[#allocation2 + $0x360] sm:$0xff]  }
  0xd0   :  { %3092 = vmatpush3.bf16.msra.mxu0 %v3373_v9  ;;  %v3425_v9 = vld [vmem:[#allocation2 + $0x398] sm:$0xff]  }
  0xd1   :  { %3121 = vmatprep.subr.bf16.mxu0 %v3376_v15  ;;  %v3431_v15 = vld [vmem:[#allocation2 + $0x328] sm:$0xff]  }
  0xd2   :  { %3114 = vmatpush3.bf16.msra.mxu1 %v3375_v13  ;;  %v3429_v13 = vld [vmem:[#allocation2 + $0x3a0] sm:$0xff]  }
  0xd3   :  { %1528 = vmatmul.mubr.bf16.vlgmr.msra.gmra.mrb[4].mxu0 %v481_v12  ;;  %3143 = vmatprep.subr.bf16.mxu1 %v3379_v19  ;;  %v3428_v12 = vld [vmem:[#allocation2 + $0x3e0] sm:$0xff]   ;;  %v3435_v19 = vld [vmem:[#allocation2 + $0x330] sm:$0xff]  }
  0xd4   :  { %3122 = vmatpush3.bf16.msra.mxu0 %v3378_v18  ;;  %1607 = vmatprep.mubr.bf16.mxu0 %v506_v56  ;;  %v3434_v18 = vld [vmem:[#allocation2 + $0x370] sm:$0xff]   ;;  %v3465_v56 = vld [vmem:[%s4191_s3 + $0x20] ss:$8 sps:$4 sm:$0xff]  }
  0xd5   :  { %1568 = vmatmul.mubr.bf16.vlgmr.msra.gmra.mrb[4].mxu1 %v488_v17  ;;  %3123 = vmatprep.subr.bf16.mxu0 %v3381_v22  ;;  %v3433_v17 = vld [vmem:[#allocation2 + $0x3a8] sm:$0xff]   ;;  %v3438_v22 = vld [vmem:[#allocation2 + $0x378] sm:$0xff]  }
  0xd6   :  { %3144 = vmatpush3.bf16.msra.mxu1 %v3380_v21  ;;  %1647 = vmatprep.mubr.bf16.mxu1 %v507_v60  ;;  %v3437_v21 = vld [vmem:[#allocation2 + $0x3b0] sm:$0xff]   ;;  %v3471_v60 = vld [vmem:[%s4191_s3 + $0x40] ss:$8 sps:$4 sm:$0xff]  }
  0xd7   :  { %3145 = vmatprep.subr.bf16.mxu1 %v3383_v24  ;;  %v3440_v24 = vld [vmem:[#allocation2 + $0x3f8] sm:$0xff]  }
  0xd8   :  { %3124 = vmatpush3.bf16.msra.mxu0 %v3382_v23  ;;  %v3439_v23 = vld [vmem:[#allocation2 + $0x338] sm:$0xff]  }
  0xd9   :  { %3125 = vmatprep.subr.bf16.mxu0 %v3385_v26 }
  0xda   :  { %3146 = vmatpush3.bf16.msra.mxu1 %v3384_v25  ;;  %v155_v25 = vld [vmem:[%s4188_s0 + $0x18] sm:$0xff] }
  0xdb   :  { %3147 = vmatprep.subr.bf16.mxu1 %v3387_v28  ;;  %v515_v26 = vrot.slane %v155_v25, %v3985_v34  ;;  %v508_v28 = vcombine.high %v155_v25, %v155_v25  ;;  %v3491_v25 = vld [vmem:[%s4193_s5 + $0x60] sm:$0xff]  }
  0xdc   :  { %3126 = vmatpush3.bf16.msra.mxu0 %v3386_v27  ;;  %v3441_v27 = vld [vmem:[#allocation2 + $0x3b8] sm:$0xff]  }
  0xdd   :  { %3127 = vmatprep.subr.bf16.mxu0 %v3389_v31  ;;  %v523_v31 = vcombine.high %v515_v26, %v515_v26 }
  0xde   :  { %3148 = vmatpush3.bf16.msra.mxu1 %v3388_v30  ;;  %v3442_v30 = vld [vmem:[#allocation2 + $0x440] sm:$0xff]  }
  0xdf   :  { %3149 = vmatprep.subr.bf16.mxu1 %v3391_v33  ;;  %v3444_v33 = vld [vmem:[#allocation2 + $0x400] sm:$0xff]  }
  0xe0   :  { %3128 = vmatpush3.bf16.msra.mxu0 %v3390_v32  ;;  %v522_v32 = vrot.slane %v508_v28, %v3985_v34  ;;  %v3451_v34 = vld [vmem:[#allocation2 + $0x460] sm:$0xff]   ;;  %v3494_v28 = vld [vmem:[%s4193_s5 + $0x28] sm:$0xff]  }
  0xe1   :  { %3129 = vmatprep.subr.bf16.mxu0 %v3393_v36 }
  0xe2   :  { %3150 = vmatpush3.bf16.msra.mxu1 %v3392_v35  ;;  %v3445_v35 = vld [vmem:[#allocation2 + $0x448] sm:$0xff]   ;;  %v524_v36 = vcombine.high %v522_v32, %v522_v32 }
  0xe3   :  { %3151 = vmatprep.subr.bf16.mxu1 %v3395_v38  ;;  %v3447_v38 = vld [vmem:[#allocation2 + $0x450] sm:$0xff]  }
  0xe4   :  { %3130 = vmatpush3.bf16.msra.mxu0 %v3394_v37  ;;  %v3446_v37 = vld [vmem:[#allocation2 + $0x408] sm:$0xff]  }
  0xe5   :  { %3131 = vmatprep.subr.bf16.mxu0 %v3397_v40  ;;  %v3449_v40 = vld [vmem:[#allocation2 + $0x458] sm:$0xff]  }
  0xe6   :  { %3152 = vmatpush3.bf16.msra.mxu1 %v3396_v39  ;;  %v3448_v39 = vld [vmem:[#allocation2 + $0x410] sm:$0xff]  }
  0xe7   :  { %3153 = vmatprep.subr.bf16.mxu1 %v3399_v42  ;;  %v3452_v42 = vld [vmem:[#allocation2 + $0x420] sm:$0xff]  }
  0xe8   :  { %3132 = vmatpush3.bf16.msra.mxu0 %v3398_v41  ;;  %v3450_v41 = vld [vmem:[#allocation2 + $0x418] sm:$0xff]  }
  0xe9   :  { %3133 = vmatprep.subr.bf16.mxu0 %v3401_v44  ;;  %v3453_v44 = vld [vmem:[#allocation2 + $0x468] sm:$0xff]  }
  0xea   :  { %3154 = vmatpush3.bf16.msra.mxu1 %v3400_v43  ;;  %v2789_v43 = vld.sshfl [vmem:[%s4188_s0 + $0x20] sm:$0x33 pattern:$0x76325410] }
  0xeb   :  { %3155 = vmatprep.subr.bf16.mxu1 %v3403_v46  ;;  %v3454_v46 = vld [vmem:[#allocation2 + $0x428] sm:$0xff]  }
  0xec   :  { %3134 = vmatpush3.bf16.msra.mxu0 %v3402_v45  ;;  %v532_v45 = vcombine.high %v2789_v43, %v2789_v43 }
  0xed   :  { %3135 = vmatprep.subr.bf16.mxu0 %v3405_v48  ;;  %v3456_v48 = vld [vmem:[#allocation2 + $0x430] sm:$0xff]  }
  0xee   :  { %3156 = vmatpush3.bf16.msra.mxu1 %v3404_v47  ;;  %v3455_v47 = vld [vmem:[#allocation2 + $0x470] sm:$0xff]  }
  0xef   :  { %3157 = vmatprep.subr.bf16.mxu1 %v3407_v50  ;;  %v3458_v50 = vld [vmem:[#allocation2 + $0x438] sm:$0xff]  }
  0xf0   :  { %3136 = vmatpush3.bf16.msra.mxu0 %v3406_v49  ;;  %v3457_v49 = vld [vmem:[#allocation2 + $0x478] sm:$0xff]  }
  0xf1   :  { %3165 = vmatprep.subr.bf16.mxu0 %v3409_v55  ;;  %v3467_v55 = vld [vmem:[%s4191_s3 + $0x24] ss:$8 sps:$4 sm:$0xff]  }
  0xf2   :  { %3158 = vmatpush3.bf16.msra.mxu1 %v3408_v53  ;;  %v3464_v53 = vld [vmem:[%s4191_s3 + $0x14] ss:$8 sps:$4 sm:$0xff]  }
  0xf3   :  { %1608 = vmatmul.mubr.bf16.vlgmr.msra.gmra.mrb[8].mxu0 %v498_v52  ;;  %3187 = vmatprep.subr.bf16.mxu1 %v3412_v59  ;;  %v3461_v52 = vld [vmem:[%s4191_s3 + $0x4] ss:$8 sps:$4 sm:$0xff]  }
  0xf4   :  { %3166 = vmatpush3.bf16.msra.mxu0 %v3411_v58  ;;  %1687 = vmatprep.mubr.bf16.mxu0 %v523_v31  ;;  %v3468_v58 = vld [vmem:[%s4191_s3 + $0x30] ss:$8 sps:$4 sm:$0xff]   ;;  %v3473_v59 = vld [vmem:[%s4191_s3 + $0x44] ss:$8 sps:$4 sm:$0xff]  }
  0xf5   :  { %1648 = vmatmul.mubr.bf16.vlgmr.msra.gmra.mrb[8].mxu1 %v505_v57  ;;  %3167 = vmatprep.subr.bf16.mxu0 %v3414_v62  ;;  %v3470_v57 = vld [vmem:[%s4191_s3 + $0x34] ss:$8 sps:$4 sm:$0xff]   ;;  %v3474_v62 = vld [vmem:[%s4191_s3 + $0x50] ss:$8 sps:$4 sm:$0xff]  }
  0xf6   :  { %3188 = vmatpush3.bf16.msra.mxu1 %v3413_v61  ;;  %1727 = vmatprep.mubr.bf16.mxu1 %v524_v36  ;;  %v3476_v61 = vld [vmem:[%s4191_s3 + $0x54] ss:$8 sps:$4 sm:$0xff]  }
  0xf7   :  { %3189 = vmatprep.subr.bf16.mxu1 %v3416_v0  ;;  %v2788_v0 = vld [vmem:[#allocation4] ss:$0 sm:$0xff] }
  0xf8   :  { %3168 = vmatpush3.bf16.msra.mxu0 %v3415_v63 }
  0xf9   :  { %3169 = vmatprep.subr.bf16.mxu0 %v3418_v2  ;;  %v3479_v2 = vld [vmem:[%s4191_s3 + $0x64] ss:$8 sps:$4 sm:$0xff]  }
  0xfa   :  { %3190 = vmatpush3.bf16.msra.mxu1 %v3417_v1 }
  0xfb   :  { %3191 = vmatprep.subr.bf16.mxu1 %v3420_v4 }
  0xfc   :  { %3170 = vmatpush3.bf16.msra.mxu0 %v3419_v3 }
  0xfd   :  { %3171 = vmatprep.subr.bf16.mxu0 %v3422_v6  ;;  %v3477_v6 = vld [vmem:[%s4191_s3 + $0x60] ss:$8 sps:$4 sm:$0xff]  }
  0xfe   :  { %3192 = vmatpush3.bf16.msra.mxu1 %v3421_v5 }
  0xff   :  { %3193 = vmatprep.subr.bf16.mxu1 %v3424_v8 }
 0x100   :  { %3172 = vmatpush3.bf16.msra.mxu0 %v3423_v7 }
 0x101   :  { %3173 = vmatprep.subr.bf16.mxu0 %v3426_v10 }
 0x102   :  { %3194 = vmatpush3.bf16.msra.mxu1 %v3425_v9 }
 0x103   :  { %3195 = vmatprep.subr.bf16.mxu1 %v3428_v12 }
 0x104   :  { %3174 = vmatpush3.bf16.msra.mxu0 %v3427_v11 }
 0x105   :  { %3175 = vmatprep.subr.bf16.mxu0 %v3430_v14 }
 0x106   :  { %3196 = vmatpush3.bf16.msra.mxu1 %v3429_v13  ;;  %v3482_v13 = vld [vmem:[%s4191_s3 + $0x74] ss:$8 sps:$4 sm:$0xff]  }
 0x107   :  { %3197 = vmatprep.subr.bf16.mxu1 %v3432_v16  ;;  %v3782_v16 = vmov 0  }
 0x108   :  { %3176 = vmatpush3.bf16.msra.mxu0 %v3431_v15  ;;  %v3480_v15 = vld [vmem:[%s4191_s3 + $0x70] ss:$8 sps:$4 sm:$0xff]  }
 0x109   :  { %3177 = vmatprep.subr.bf16.mxu0 %v3434_v18  ;;  %v3484_v18 = vld [vmem:[%s4193_s5] sm:$0xff]  }
 0x10a   :  { %3198 = vmatpush3.bf16.msra.mxu1 %v3433_v17  ;;  %v3483_v17 = vld [vmem:[%s4193_s5 + $0x40] sm:$0xff]  }
 0x10b   :  { %3199 = vmatprep.subr.bf16.mxu1 %v3436_v20  ;;  %v3486_v20 = vld [vmem:[%s4193_s5 + $0x8] sm:$0xff]  }
 0x10c   :  { %3178 = vmatpush3.bf16.msra.mxu0 %v3435_v19  ;;  %v3485_v19 = vld [vmem:[%s4193_s5 + $0x48] sm:$0xff]  }
 0x10d   :  { %3179 = vmatprep.subr.bf16.mxu0 %v3438_v22  ;;  %v3488_v22 = vld [vmem:[%s4193_s5 + $0x10] sm:$0xff]  }
 0x10e   :  { %3200 = vmatpush3.bf16.msra.mxu1 %v3437_v21  ;;  %v3487_v21 = vld [vmem:[%s4193_s5 + $0x50] sm:$0xff]  }
 0x10f   :  { %3201 = vmatprep.subr.bf16.mxu1 %v3440_v24  ;;  %v3490_v24 = vld [vmem:[%s4193_s5 + $0x18] sm:$0xff]  }
 0x110   :  { %3180 = vmatpush3.bf16.msra.mxu0 %v3439_v23  ;;  %v3489_v23 = vld [vmem:[%s4193_s5 + $0x58] sm:$0xff]  }
 0x111   :  { %3209 = vmatprep.subr.bf16.mxu0 %v3442_v30 }
 0x112   :  { %3202 = vmatpush3.bf16.msra.mxu1 %v3441_v27  ;;  %v3493_v27 = vld [vmem:[%s4193_s5 + $0x68] sm:$0xff]  }
 0x113   :  { %1688 = vmatmul.mubr.bf16.vlgmr.msra.gmra.mrb[12].mxu0 %v515_v26  ;;  %1885 = vmatprep.subr.bf16.mxu1 %v3461_v52  ;;  %v3492_v26 = vld [vmem:[%s4193_s5 + $0x20] sm:$0xff]  }
 0x114   :  { %3210 = vmatpush3.bf16.msra.mxu0 %v3444_v33  ;;  %1767 = vmatprep.mubr.bf16.mxu0 %v532_v45 }
 0x115   :  { %1728 = vmatmul.mubr.bf16.vlgmr.msra.gmra.mrb[12].mxu1 %v522_v32  ;;  %3211 = vmatprep.subr.bf16.mxu0 %v3445_v35 }
 0x116   :  { %1886 = vmatpush1.bf16.msra.mxu1 %v3459_v51  ;;  %1917 = vmatprep.mubr.bf16.mxu1 %v3782_v16 }
 0x117   :  { %1887 = vmatprep.subr.bf16.mxu1 %v3464_v53 }
 0x118   :  { %3212 = vmatpush3.bf16.msra.mxu0 %v3446_v37 }
 0x119   :  { %3213 = vmatprep.subr.bf16.mxu0 %v3447_v38 }
 0x11a   :  { %1888 = vmatpush1.bf16.msra.mxu1 %v3462_v54 }
 0x11b   :  { %1889 = vmatprep.subr.bf16.mxu1 %v3467_v55 }
 0x11c   :  { %3214 = vmatpush3.bf16.msra.mxu0 %v3448_v39 }
 0x11d   :  { %3215 = vmatprep.subr.bf16.mxu0 %v3449_v40 }
 0x11e   :  { %1890 = vmatpush1.bf16.msra.mxu1 %v3465_v56 }
 0x11f   :  { %1891 = vmatprep.subr.bf16.mxu1 %v3470_v57 }
 0x120   :  { %3216 = vmatpush3.bf16.msra.mxu0 %v3450_v41 }
 0x121   :  { %3217 = vmatprep.subr.bf16.mxu0 %v3451_v34 }
 0x122   :  { %1892 = vmatpush1.bf16.msra.mxu1 %v3468_v58 }
 0x123   :  { %1893 = vmatprep.subr.bf16.mxu1 %v3473_v59 }
 0x124   :  { %3218 = vmatpush3.bf16.msra.mxu0 %v3452_v42 }
 0x125   :  { %3219 = vmatprep.subr.bf16.mxu0 %v3453_v44 }
 0x126   :  { %1894 = vmatpush1.bf16.msra.mxu1 %v3471_v60 }
 0x127   :  { %1895 = vmatprep.subr.bf16.mxu1 %v3476_v61 }
 0x128   :  { %3220 = vmatpush3.bf16.msra.mxu0 %v3454_v46 }
 0x129   :  { %3221 = vmatprep.subr.bf16.mxu0 %v3455_v47 }
 0x12a   :  { %1896 = vmatpush1.bf16.msra.mxu1 %v3474_v62 }
 0x12b   :  { %1897 = vmatprep.subr.bf16.mxu1 %v3479_v2 }
 0x12c   :  { %3222 = vmatpush3.bf16.msra.mxu0 %v3456_v48 }
 0x12d   :  { %3223 = vmatprep.subr.bf16.mxu0 %v3457_v49 }
 0x12e   :  { %1898 = vmatpush1.bf16.msra.mxu1 %v3477_v6 }
 0x12f   :  { %1899 = vmatprep.subr.bf16.mxu1 %v3482_v13  ;;  %v3498_v13 = vld [vmem:[%s4193_s5 + $0x38] sm:$0xff]  }
 0x130   :  { %3224 = vmatpush3.bf16.msra.mxu0 %v3458_v50 }
 0x131   :  { %3231 = vmatprep.subr.bf16.mxu0 %v3483_v17  ;;  %v3504_v17 = vld [vmem:[%s4195_s7 + $0x14] ss:$8 sps:$4 sm:$0xff]  }
 0x132   :  { %1900 = vmatpush1.bf16.msra.mxu1 %v3480_v15  ;;  %v3501_v15 = vld [vmem:[%s4195_s7 + $0x4] ss:$8 sps:$4 sm:$0xff]  }
 0x133   :  { %1768 = vmatmul.mubr.bf16.vlgmr.msra.gmra.mrb[16].mxu0 %v2789_v43  ;;  %2214 = vmatprep.subr.bf16.mxu1 %v3501_v15  ;;  %v3543_v15 = vld [vmem:[#allocation12 + $0x64] ss:$8 sps:$4 sm:$0xff]  }
 0x134   :  { %3232 = vmatpush3.bf16.msra.mxu0 %v3484_v18  ;;  %v3502_v18 = vld [vmem:[%s4195_s7 + $0x10] ss:$8 sps:$4 sm:$0xff]  }
 0x135   :  { %3233 = vmatprep.subr.bf16.mxu0 %v3485_v19  ;;  %v3507_v19 = vld [vmem:[%s4195_s7 + $0x24] ss:$8 sps:$4 sm:$0xff]  }
 0x138   :  { %3234 = vmatpush3.bf16.msra.mxu0 %v3486_v20  ;;  %v3505_v20 = vld [vmem:[%s4195_s7 + $0x20] ss:$8 sps:$4 sm:$0xff]  }
 0x139   :  { %3235 = vmatprep.subr.bf16.mxu0 %v3487_v21  ;;  %v3510_v21 = vld [vmem:[%s4195_s7 + $0x34] ss:$8 sps:$4 sm:$0xff]  }
 0x13c   :  { %3236 = vmatpush3.bf16.msra.mxu0 %v3488_v22  ;;  %v3508_v22 = vld [vmem:[%s4195_s7 + $0x30] ss:$8 sps:$4 sm:$0xff]  }
 0x13d   :  { %3237 = vmatprep.subr.bf16.mxu0 %v3489_v23  ;;  %v3513_v23 = vld [vmem:[%s4195_s7 + $0x44] ss:$8 sps:$4 sm:$0xff]  }
 0x140   :  { %3238 = vmatpush3.bf16.msra.mxu0 %v3490_v24  ;;  %v3511_v24 = vld [vmem:[%s4195_s7 + $0x40] ss:$8 sps:$4 sm:$0xff]  }
 0x141   :  { %3239 = vmatprep.subr.bf16.mxu0 %v3491_v25  ;;  %v3516_v25 = vld [vmem:[%s4195_s7 + $0x54] ss:$8 sps:$4 sm:$0xff]  }
 0x144   :  { %3240 = vmatpush3.bf16.msra.mxu0 %v3492_v26  ;;  %v3514_v26 = vld [vmem:[%s4195_s7 + $0x50] ss:$8 sps:$4 sm:$0xff]  }
 0x145   :  { %3241 = vmatprep.subr.bf16.mxu0 %v3493_v27  ;;  %v3519_v27 = vld [vmem:[%s4195_s7 + $0x64] ss:$8 sps:$4 sm:$0xff]  }
 0x148   :  { %3242 = vmatpush3.bf16.msra.mxu0 %v3494_v28  ;;  %v3517_v28 = vld [vmem:[%s4195_s7 + $0x60] ss:$8 sps:$4 sm:$0xff]  }
 0x186   :  { %v3049_v63 = vpop.f32.mrb[0].mxu0 }
 0x187   :  { %v3050_v1 = vpop.f32.mrb[1].mxu0 }
 0x188   :  { %v3051_v3 = vadd.f32 %v3050_v1, %v3049_v63  ;;  %v3052_v4 = vpop.f32.mrb[2].mxu0  ;;  %v3071_v5 = vpop.f32.mrb[0].mxu1 }
 0x189   :  { %v3053_v7 = vpop.f32.mrb[3].mxu0  ;;  %v3072_v8 = vpop.f32.mrb[1].mxu1 }
 0x18a   :  { %v1450_v9 = vadd.f32 %v3051_v3, %v2788_v0  ;;  %v3073_v10 = vadd.f32 %v3072_v8, %v3071_v5  ;;  %v3074_v11 = vpop.f32.mrb[2].mxu1 }
 0x18b   :  { %v3075_v12 = vpop.f32.mrb[3].mxu1  ;;  %v3496_v11 = vld [vmem:[%s4193_s5 + $0x30] sm:$0xff]  }
 0x18c   :  { %v1490_v14 = vadd.f32 %v3073_v10, %v1450_v9  ;;  %v3495_v10 = vld [vmem:[%s4193_s5 + $0x70] sm:$0xff]   ;;  %v3497_v12 = vld [vmem:[%s4193_s5 + $0x78] sm:$0xff]  }
 0x18d   :  { %3243 = vmatprep.subr.bf16.mxu0 %v3495_v10  ;;  %v3532_v10 = vld [vmem:[#allocation12 + $0x30] ss:$8 sps:$4 sm:$0xff]  }
 0x18e   :  { %3244 = vmatpush3.bf16.msra.mxu0 %v3496_v11  ;;  %v3537_v11 = vld [vmem:[#allocation12 + $0x44] ss:$8 sps:$4 sm:$0xff]  }
 0x18f   :  { %3245 = vmatprep.subr.bf16.mxu0 %v3497_v12  ;;  %v3535_v12 = vld [vmem:[#allocation12 + $0x40] ss:$8 sps:$4 sm:$0xff]  }
 0x192   :  { %3246 = vmatpush3.bf16.msra.mxu0 %v3498_v13  ;;  %v3540_v13 = vld [vmem:[#allocation12 + $0x54] ss:$8 sps:$4 sm:$0xff]  }
 0x1a6   :  { %v3093_v30 = vpop.f32.mrb[4].mxu0 }
 0x1a7   :  { %v3094_v31 = vpop.f32.mrb[5].mxu0 }
 0x1a8   :  { %v3095_v32 = vadd.f32 %v3094_v31, %v3093_v30  ;;  %v3096_v33 = vpop.f32.mrb[6].mxu0  ;;  %v3115_v35 = vpop.f32.mrb[4].mxu1  ;;  %v4154_v30 = vsub.s32 0, %v3982_v29  ;;  %v1793_v31 = vld [vmem:[%s4192_s4] sm:$0x3] }
 0x1a9   :  { %v3097_v36 = vpop.f32.mrb[7].mxu0  ;;  %v3116_v37 = vpop.f32.mrb[5].mxu1 }
 0x1aa   :  { %v1530_v38 = vadd.f32 %v3095_v32, %v1490_v14  ;;  %v3117_v39 = vadd.f32 %v3116_v37, %v3115_v35  ;;  %v3118_v40 = vpop.f32.mrb[6].mxu1  ;;  %v3499_v14 = vld [vmem:[%s4195_s7] ss:$8 sps:$4 sm:$0xff]   ;;  %v4160_v32 = vsub.s32 1, %v3982_v29  ;;  %v1798_v33 = vrot.slane %v1793_v31, %v4154_v30  ;;  %v3522_v29 = vld [vmem:[%s4195_s7 + $0x74] ss:$8 sps:$4 sm:$0xff]  }
 0x1ab   :  { %v3119_v41 = vpop.f32.mrb[7].mxu1 }
 0x1ac   :  { %v1570_v34 = vadd.f32 %v3117_v39, %v1530_v38  ;;  %v1802_v35 = vrot.slane %v1793_v31, %v4160_v32 }
 0x1c6   :  { %v3137_v42 = vpop.f32.mrb[8].mxu0 }
 0x1c7   :  { %v3138_v43 = vpop.f32.mrb[9].mxu0 }
 0x1c8   :  { %v3139_v44 = vadd.f32 %v3138_v43, %v3137_v42  ;;  %v3140_v45 = vpop.f32.mrb[10].mxu0  ;;  %v3159_v46 = vpop.f32.mrb[8].mxu1 }
 0x1c9   :  { %v3141_v47 = vpop.f32.mrb[11].mxu0  ;;  %v3160_v48 = vpop.f32.mrb[9].mxu1  ;;  %v3520_v45 = vld [vmem:[%s4195_s7 + $0x70] ss:$8 sps:$4 sm:$0xff]  }
 0x1ca   :  { %v1610_v49 = vadd.f32 %v3139_v44, %v1570_v34  ;;  %v3161_v50 = vadd.f32 %v3160_v48, %v3159_v46  ;;  %v3162_v51 = vpop.f32.mrb[10].mxu1  ;;  %v3525_v46 = vld [vmem:[#allocation12 + $0x4] ss:$8 sps:$4 sm:$0xff]  }
 0x1cb   :  { %v3163_v52 = vpop.f32.mrb[11].mxu1  ;;  %v3547_v47 = vld [vmem:[#allocation9 + $0x40] sm:$0xff]   ;;  %v3551_v51 = vld [vmem:[#allocation9 + $0x50] sm:$0xff]  }
 0x1cc   :  { %v1650_v53 = vadd.f32 %v3161_v50, %v1610_v49  ;;  %v3548_v48 = vld [vmem:[#allocation9] sm:$0xff]   ;;  %v3549_v49 = vld [vmem:[#allocation9 + $0x48] sm:$0xff]   ;;  %3253 = vmatprep.subr.bf16.mxu0 %v3547_v47  ;;  %v3552_v52 = vld [vmem:[#allocation9 + $0x10] sm:$0xff]  }
 0x1cd   :  { %v3550_v50 = vld [vmem:[#allocation9 + $0x8] sm:$0xff]  }
 0x1ce   :  { %v3573_v47 = vld [vmem:[#allocation13 + $0x68] sm:$0xff]  }
 0x1e6   :  { %v3181_v54 = vpop.f32.mrb[12].mxu0 }
 0x1e7   :  { %v3182_v55 = vpop.f32.mrb[13].mxu0 }
 0x1e8   :  { %v3183_v56 = vadd.f32 %v3182_v55, %v3181_v54  ;;  %v3184_v57 = vpop.f32.mrb[14].mxu0  ;;  %v3203_v58 = vpop.f32.mrb[12].mxu1  ;;  %v3554_v54 = vld [vmem:[#allocation9 + $0x18] sm:$0xff]   ;;  %v3555_v55 = vld [vmem:[#allocation9 + $0x60] sm:$0xff]  }
 0x1e9   :  { %v3185_v59 = vpop.f32.mrb[15].mxu0  ;;  %v3204_v60 = vpop.f32.mrb[13].mxu1  ;;  %v3557_v57 = vld [vmem:[#allocation9 + $0x68] sm:$0xff]  }
 0x1ea   :  { %v1690_v61 = vadd.f32 %v3183_v56, %v1650_v53  ;;  %v3205_v62 = vadd.f32 %v3204_v60, %v3203_v58  ;;  %v3206_v63 = vpop.f32.mrb[14].mxu1  ;;  %v3553_v53 = vld [vmem:[#allocation9 + $0x58] sm:$0xff]   ;;  %v3556_v56 = vld [vmem:[#allocation9 + $0x20] sm:$0xff]   ;;  %v3558_v58 = vld [vmem:[#allocation9 + $0x28] sm:$0xff]  }
 0x1eb   :  { %v3207_v0 = vpop.f32.mrb[15].mxu1  ;;  %v2950_v60 = vld [vmem:[#allocation6] ss:$0 sm:$0xff] }
 0x1ec   :  { %v1730_v1 = vadd.f32 %v3205_v62, %v1690_v61 }
 0x206   :  { %v3225_v2 = vpop.f32.mrb[16].mxu0 }
 0x207   :  { %v3226_v3 = vpop.f32.mrb[17].mxu0 }
 0x208   :  { %v3227_v4 = vadd.f32 %v3226_v3, %v3225_v2  ;;  %v3228_v5 = vpop.f32.mrb[18].mxu0  ;;  %v3523_v2 = vld [vmem:[#allocation12] ss:$8 sps:$4 sm:$0xff]  }
 0x209   :  { %v3229_v6 = vpop.f32.mrb[19].mxu0  ;;  %v3526_v5 = vld [vmem:[#allocation12 + $0x10] ss:$8 sps:$4 sm:$0xff]  }
 0x20a   :  { %v1770_v7 = vadd.f32 %v3227_v4, %v1730_v1  ;;  %v3528_v4 = vld [vmem:[#allocation12 + $0x14] ss:$8 sps:$4 sm:$0xff]   ;;  %v3531_v6 = vld [vmem:[#allocation12 + $0x24] ss:$8 sps:$4 sm:$0xff]  }
 0x20c   :  { %v1775_v8 = vmax.f32 %v1770_v7, 0.0  ;;  %v3529_v7 = vld [vmem:[#allocation12 + $0x20] ss:$8 sps:$4 sm:$0xff]  }
 0x20e   :  { %v4095_v9 = vpack.c.bf16 %v1775_v8, %v1775_v8  ;;  %v3534_v8 = vld [vmem:[#allocation12 + $0x34] ss:$8 sps:$4 sm:$0xff]  }
 0x210   :  { %1918 = vmatmul.mubr.bf16.vlgmr.msra.gmra.mrb[16].mxu1 %v4095_v9 }
 0x211   :  { %2246 = vmatprep.mubr.bf16.mxu1 %v3782_v16  ;;  %2215 = vmatpush1.bf16.msra.mxu1 %v3499_v14  ;;  %v3538_v14 = vld [vmem:[#allocation12 + $0x50] ss:$8 sps:$4 sm:$0xff]  }
 0x212   :  { %2216 = vmatprep.subr.bf16.mxu1 %v3504_v17  ;;  %v3546_v17 = vld [vmem:[#allocation12 + $0x74] ss:$8 sps:$4 sm:$0xff]  }
 0x215   :  { %2217 = vmatpush1.bf16.msra.mxu1 %v3502_v18  ;;  %v3544_v18 = vld [vmem:[#allocation12 + $0x70] ss:$8 sps:$4 sm:$0xff]  }
 0x216   :  { %2218 = vmatprep.subr.bf16.mxu1 %v3507_v19  ;;  %v3559_v19 = vld [vmem:[#allocation9 + $0x70] sm:$0xff]  }
 0x219   :  { %2219 = vmatpush1.bf16.msra.mxu1 %v3505_v20  ;;  %v3560_v20 = vld [vmem:[#allocation9 + $0x30] sm:$0xff]  }
 0x21a   :  { %2220 = vmatprep.subr.bf16.mxu1 %v3510_v21  ;;  %v3561_v21 = vld [vmem:[#allocation9 + $0x78] sm:$0xff]  }
 0x21d   :  { %2221 = vmatpush1.bf16.msra.mxu1 %v3508_v22  ;;  %v3562_v22 = vld [vmem:[#allocation9 + $0x38] sm:$0xff]  }
 0x21e   :  { %2222 = vmatprep.subr.bf16.mxu1 %v3513_v23  ;;  %v3563_v23 = vld [vmem:[#allocation13 + $0x40] sm:$0xff]  }
 0x221   :  { %2223 = vmatpush1.bf16.msra.mxu1 %v3511_v24  ;;  %v2122_v24 = vld [vmem:[#allocation7] sm:$0x3] }
 0x222   :  { %2224 = vmatprep.subr.bf16.mxu1 %v3516_v25  ;;  %v2127_v25 = vrot.slane %v2122_v24, %v4154_v30 }
 0x225   :  { %2225 = vmatpush1.bf16.msra.mxu1 %v3514_v26  ;;  %v2131_v26 = vrot.slane %v2122_v24, %v4160_v32 }
 0x226   :  { %2226 = vmatprep.subr.bf16.mxu1 %v3519_v27 }
 0x229   :  { %2227 = vmatpush1.bf16.msra.mxu1 %v3517_v28 }
 0x22a   :  { %2228 = vmatprep.subr.bf16.mxu1 %v3522_v29  ;;  %v3570_v29 = vld [vmem:[#allocation13 + $0x18] sm:$0xff]  }
 0x22d   :  { %2229 = vmatpush1.bf16.msra.mxu1 %v3520_v45  ;;  %v3571_v45 = vld [vmem:[#allocation13 + $0x60] sm:$0xff]  }
 0x22e   :  { %2542 = vmatprep.subr.bf16.mxu1 %v3525_v46  ;;  %v3572_v46 = vld [vmem:[#allocation13 + $0x20] sm:$0xff]  }
 0x2e3   :  { %v1919_v36 = vpop.f32.mrb[16].mxu1 }
 0x2e4   :  { %v1920_v37 = vadd.f32 %v1919_v36, %v1798_v33  ;;  %v1921_v38 = vpop.f32.mrb[17].mxu1 }
 0x2e5   :  { %v1922_v39 = vadd.f32 %v1921_v38, %v1802_v35  ;;  %v1923_v40 = vpop.f32.mrb[18].mxu1 }
 0x2e6   :  { %v1926_v41 = vmax.f32 %v1920_v37, 0.0  ;;  %v1924_v34 = vpop.f32.mrb[19].mxu1 }
 0x2e7   :  { %v1927_v42 = vmax.f32 %v1922_v39, 0.0  ;;  %v3564_v39 = vld [vmem:[#allocation13] sm:$0xff]   ;;  %v3566_v34 = vld [vmem:[#allocation13 + $0x8] sm:$0xff]  }
 0x2e8   :  { %v1928_v44 = vpack.c.bf16 %v1926_v41, %v1926_v41  ;;  %v3565_v41 = vld [vmem:[#allocation13 + $0x48] sm:$0xff]  }
 0x2e9   :  { %v1929_v43 = vpack.c.bf16 %v1927_v42, %v1927_v42  ;;  %v3567_v42 = vld [vmem:[#allocation13 + $0x50] sm:$0xff]  }
 0x2eb   :  { %2097 = vmatprep.mubr.bf16.mxu0 %v1929_v43  ;;  %v3568_v43 = vld [vmem:[#allocation13 + $0x10] sm:$0xff]  }
 0x2ec   :  { %2098 = vmatmul.mubr.bf16.vlgmr.msra.gmra.mrb[20].mxu0 %v1928_v44  ;;  %v3569_v44 = vld [vmem:[#allocation13 + $0x58] sm:$0xff]  }
 0x2ed   :  { %3254 = vmatpush3.bf16.msra.mxu0 %v3548_v48  ;;  %v3574_v48 = vld [vmem:[#allocation13 + $0x28] sm:$0xff]  }
 0x2ee   :  { %3255 = vmatprep.subr.bf16.mxu0 %v3549_v49  ;;  %v2450_v49 = vld [vmem:[%s4200_s12] sm:$0x3] }
 0x2f1   :  { %3256 = vmatpush3.bf16.msra.mxu0 %v3550_v50  ;;  %v3575_v50 = vld [vmem:[#allocation13 + $0x70] sm:$0xff]  }
 0x2f2   :  { %3257 = vmatprep.subr.bf16.mxu0 %v3551_v51  ;;  %v2455_v51 = vrot.slane %v2450_v49, %v4154_v30 }
 0x2f5   :  { %3258 = vmatpush3.bf16.msra.mxu0 %v3552_v52  ;;  %v2459_v52 = vrot.slane %v2450_v49, %v4160_v32 }
 0x2f6   :  { %3259 = vmatprep.subr.bf16.mxu0 %v3553_v53  ;;  %v3576_v53 = vld [vmem:[#allocation13 + $0x30] sm:$0xff]  }
 0x2f9   :  { %3260 = vmatpush3.bf16.msra.mxu0 %v3554_v54  ;;  %v3577_v54 = vld [vmem:[#allocation13 + $0x78] sm:$0xff]  }
 0x2fa   :  { %3261 = vmatprep.subr.bf16.mxu0 %v3555_v55 }
 0x2fd   :  { %3262 = vmatpush3.bf16.msra.mxu0 %v3556_v56 }
 0x2fe   :  { %3263 = vmatprep.subr.bf16.mxu0 %v3557_v57 }
 0x301   :  { %3264 = vmatpush3.bf16.msra.mxu0 %v3558_v58 }
 0x302   :  { %3265 = vmatprep.subr.bf16.mxu0 %v3559_v19 }
 0x305   :  { %3266 = vmatpush3.bf16.msra.mxu0 %v3560_v20 }
 0x306   :  { %3267 = vmatprep.subr.bf16.mxu0 %v3561_v21 }
 0x309   :  { %3268 = vmatpush3.bf16.msra.mxu0 %v3562_v22 }
 0x30a   :  { %3275 = vmatprep.subr.bf16.mxu0 %v3563_v23 }
 0x3bf   :  { %v3247_v59 = vpop.f32.mrb[20].mxu0 }
 0x3c0   :  { %v3248_v61 = vpop.f32.mrb[21].mxu0 }
 0x3c1   :  { %v3249_v62 = vadd.f32 %v3248_v61, %v3247_v59  ;;  %v3250_v63 = vpop.f32.mrb[22].mxu0 }
 0x3c2   :  { %v3251_v0 = vpop.f32.mrb[23].mxu0 }
 0x3c3   :  { %v2100_v1 = vadd.f32 %v3249_v62, %v2950_v60  ;;  %v3578_v60 = vld [vmem:[#allocation13 + $0x38] sm:$0xff]  }
 0x3c5   :  { %v2105_v3 = vpack.c.bf16 %v2100_v1, %v2100_v1  ;;  %v2983_v1 = vld [vmem:[#allocation10] ss:$0 sm:$0xff] }
 0x3c7   :  { %2247 = vmatmul.mubr.bf16.vlgmr.msra.gmra.mrb[20].mxu1 %v2105_v3 }
 0x3c8   :  { %2543 = vmatpush1.bf16.msra.mxu1 %v3523_v2  ;;  %2574 = vmatprep.mubr.bf16.mxu1 %v3782_v16  ;;  %v3541_v16 = vld [vmem:[#allocation12 + $0x60] ss:$8 sps:$4 sm:$0xff]  }
 0x3c9   :  { %2544 = vmatprep.subr.bf16.mxu1 %v3528_v4 }
 0x3cc   :  { %2545 = vmatpush1.bf16.msra.mxu1 %v3526_v5 }
 0x3cd   :  { %2546 = vmatprep.subr.bf16.mxu1 %v3531_v6 }
 0x3d0   :  { %2547 = vmatpush1.bf16.msra.mxu1 %v3529_v7 }
 0x3d1   :  { %2548 = vmatprep.subr.bf16.mxu1 %v3534_v8 }
 0x3d4   :  { %2549 = vmatpush1.bf16.msra.mxu1 %v3532_v10 }
 0x3d5   :  { %2550 = vmatprep.subr.bf16.mxu1 %v3537_v11  ;;  %v3016_v11 = vld [vmem:[%s4202_s14] ss:$0 sm:$0xff] }
 0x3d8   :  { %2551 = vmatpush1.bf16.msra.mxu1 %v3535_v12 }
 0x3d9   :  { %2552 = vmatprep.subr.bf16.mxu1 %v3540_v13 }
 0x3dc   :  { %2553 = vmatpush1.bf16.msra.mxu1 %v3538_v14 }
 0x3dd   :  { %2554 = vmatprep.subr.bf16.mxu1 %v3543_v15 }
 0x3e0   :  { %2555 = vmatpush1.bf16.msra.mxu1 %v3541_v16 }
 0x3e1   :  { %2556 = vmatprep.subr.bf16.mxu1 %v3546_v17 }
 0x3e4   :  { %2557 = vmatpush1.bf16.msra.mxu1 %v3544_v18 }
 0x3e7   :  { %2575 = vmatmul.mubr.bf16.vlgmr.msra.gmra.mrb[24].mxu1 %v4095_v9 }
 0x49a   :  { %v2248_v27 = vpop.f32.mrb[20].mxu1 }
 0x49b   :  { %v2249_v28 = vadd.f32 %v2248_v27, %v2127_v25  ;;  %v2250_v31 = vpop.f32.mrb[21].mxu1 }
 0x49c   :  { %v2251_v33 = vadd.f32 %v2250_v31, %v2131_v26  ;;  %v2252_v9 = vpop.f32.mrb[22].mxu1 }
 0x49d   :  { %v2255_v35 = vmax.f32 %v2249_v28, 0.0  ;;  %v2253_v36 = vpop.f32.mrb[23].mxu1 }
 0x49e   :  { %v2256_v37 = vmax.f32 %v2251_v33, 0.0 }
 0x49f   :  { %v2257_v40 = vpack.c.bf16 %v2255_v35, %v2255_v35 }
 0x4a0   :  { %v2258_v38 = vpack.c.bf16 %v2256_v37, %v2256_v37 }
 0x4a2   :  { %2426 = vmatprep.mubr.bf16.mxu0 %v2258_v38 }
 0x4a3   :  { %2427 = vmatmul.mubr.bf16.vlgmr.msra.gmra.mrb[24].mxu0 %v2257_v40 }
 0x4a4   :  { %3276 = vmatpush3.bf16.msra.mxu0 %v3564_v39 }
 0x4a5   :  { %3277 = vmatprep.subr.bf16.mxu0 %v3565_v41 }
 0x4a8   :  { %3278 = vmatpush3.bf16.msra.mxu0 %v3566_v34 }
 0x4a9   :  { %3279 = vmatprep.subr.bf16.mxu0 %v3567_v42 }
 0x4ac   :  { %3280 = vmatpush3.bf16.msra.mxu0 %v3568_v43 }
 0x4ad   :  { %3281 = vmatprep.subr.bf16.mxu0 %v3569_v44 }
 0x4b0   :  { %3282 = vmatpush3.bf16.msra.mxu0 %v3570_v29 }
 0x4b1   :  { %3283 = vmatprep.subr.bf16.mxu0 %v3571_v45 }
 0x4b4   :  { %3284 = vmatpush3.bf16.msra.mxu0 %v3572_v46 }
 0x4b5   :  { %3285 = vmatprep.subr.bf16.mxu0 %v3573_v47 }
 0x4b8   :  { %3286 = vmatpush3.bf16.msra.mxu0 %v3574_v48 }
 0x4b9   :  { %3287 = vmatprep.subr.bf16.mxu0 %v3575_v50 }
 0x4ba   :  { %v2576_v55 = vpop.f32.mrb[24].mxu1 }
 0x4bb   :  { %v2577_v56 = vadd.f32 %v2576_v55, %v2455_v51  ;;  %v2578_v57 = vpop.f32.mrb[25].mxu1 }
 0x4bc   :  { %v2579_v58 = vadd.f32 %v2578_v57, %v2459_v52  ;;  %v2580_v59 = vpop.f32.mrb[26].mxu1  ;;  %3288 = vmatpush3.bf16.msra.mxu0 %v3576_v53 }
 0x4bd   :  { %v2583_v61 = vmax.f32 %v2577_v56, 0.0  ;;  %v2581_v62 = vpop.f32.mrb[27].mxu1  ;;  %3289 = vmatprep.subr.bf16.mxu0 %v3577_v54 }
 0x4be   :  { %v2584_v63 = vmax.f32 %v2579_v58, 0.0 }
 0x4bf   :  { %v2585_v30 = vpack.c.bf16 %v2583_v61, %v2583_v61 }
 0x4c0   :  { %v2586_v0 = vpack.c.bf16 %v2584_v63, %v2584_v63  ;;  %3290 = vmatpush3.bf16.msra.mxu0 %v3578_v60 }
 0x4c2   :  { %2754 = vmatprep.mubr.bf16.mxu0 %v2586_v0 }
 0x4c3   :  { %2755 = vmatmul.mubr.bf16.vlgmr.msra.gmra.mrb[28].mxu0 %v2585_v30 }
 0x576   :  { %v3269_v32 = vpop.f32.mrb[24].mxu0 }
 0x577   :  { %v3270_v2 = vpop.f32.mrb[25].mxu0 }
 0x578   :  { %v3271_v3 = vadd.f32 %v3270_v2, %v3269_v32  ;;  %v3272_v4 = vpop.f32.mrb[26].mxu0 }
 0x579   :  { %v3273_v5 = vpop.f32.mrb[27].mxu0 }
 0x57a   :  { %v2429_v6 = vadd.f32 %v3271_v3, %v2983_v1 }
 0x57c   :  { %v2762_v7 = vmul.f32 %v2429_v6, %v2429_v6 }
 0x57e   :  { %v2764_v8 = vsel %vm2763_vm0, %v2762_v7, 0.0 }
 0x57f   :  { %2765 = vadd.xlane.f32.xlu0 %v2764_v8 }
 0x596   :  { %v3291_v10 = vpop.f32.mrb[28].mxu0 }
 0x597   :  { %v3292_v12 = vpop.f32.mrb[29].mxu0 }
 0x598   :  { %v3293_v13 = vadd.f32 %v3292_v12, %v3291_v10  ;;  %v3294_v14 = vpop.f32.mrb[30].mxu0 }
 0x599   :  { %v3295_v15 = vpop.f32.mrb[31].mxu0 }
 0x59a   :  { %v2757_v16 = vadd.f32 %v3293_v13, %v3016_v11 }
 0x59c   :  { %v2771_v17 = vmul.f32 %v2757_v16, %v2757_v16 }
 0x59e   :  { %v2772_v18 = vsel %vm2763_vm0, %v2771_v17, 0.0 }
 0x59f   :  { %2773 = vadd.xlane.f32.xlu0 %v2772_v18 }
 0x60c   :  { %v2766_v19 = vpop.xlane.xlu0 %2765 }
 0x60d   :  { %v2767_v20 = vmax.f32 %v2766_v19, 1e-24 }
 0x60f   :  { %3579 = vrsqrt.f32 %v2767_v20 }
 0x619   :  { %v3580_v21 = vpop.eup %3579 }
 0x61a   :  { %v2769_v22 = vmul.f32 %v3580_v21, %v2429_v6 }
 0x61c   :  { %2770 = vst [vmem:[%s4203_s15] sm:$0xf] %v2769_v22 }
 0x62c   :  { %v2774_v23 = vpop.xlane.xlu0 %2773 }
 0x62d   :  { %v2775_v24 = vmax.f32 %v2774_v23, 1e-24 }
 0x62f   :  { %3581 = vrsqrt.f32 %v2775_v24 }
 0x639   :  { %v3582_v25 = vpop.eup %3581 }
 0x63a   :  { %v2777_v26 = vmul.f32 %v3582_v25, %v2757_v16 }
 0x63c   :  { %2778 = vst [vmem:[%s4203_s15 + $0x4] sm:$0xf] %v2777_v26 }
 0x63d   :  { %2783 = vsyncpa [#allocation3], 1 }
 0x63e   :  { %2784 = vsyncpa [#allocation5], 1 }
 0x63f   :  { %2785 = vsyncpa [#allocation8], 1 }
 0x640   :  { %2786 = vsyncpa [#allocation11], 1 }
 0x641   :  { %2787 = vsyncpa [#allocation14], 1 }

</bundles_post_ra>
